<compile_context>
chip_gen: v7x
topology: tpu7x:2x2x1
jax: 0.10.0
libtpu: 0.0.40
codegen_flags: <defaults>
</compile_context>

<pallas_src>
import functools
import math

import jax
import jax.numpy as jnp
from jax import lax
from jax.experimental import pallas as pl
from jax.experimental.pallas import tpu as pltpu


def _round_up(x, m):
    return (x + m - 1) // m * m


def _sigmoid(x):
    # EUP tanh + VALU fma; no exact divide on the serial critical path.
    return 0.5 * (jnp.tanh(0.5 * x) + 1.0)


# ------------------------- Pallas kernel (recurrence + predictor) -------------------------
def lstm_discriminator_kernel(hp, ts,
                              xg_ref,   # (Ts, BB, 4Hp) gate-table rows for this time chunk
                              whh_ref,  # (Hp, 4Hp)     W_hh^T (zero-padded)
                              wp_ref,   # (1, Hp)       predictor weight row (zero-padded)
                              bp_ref,   # (1, 1)        predictor bias
                              o_ref,    # (BB, 1)       output logits
                              h_ref,    # (BB, Hp) VMEM scratch, persists across time chunks
                              c_ref):   # (BB, Hp) VMEM scratch
    t_chunk = pl.program_id(1)

    @pl.when(t_chunk == 0)
    def _init():
        h_ref[...] = jnp.zeros_like(h_ref)
        c_ref[...] = jnp.zeros_like(c_ref)

    def step(i, carry):
        h, c = carry
        # (BB, Hp) @ (Hp, 4Hp) on the MXU; W_hh stays VMEM-resident (read per step).
        g = xg_ref[i] + jnp.dot(h, whh_ref[...], preferred_element_type=jnp.float32)
        i_g = _sigmoid(g[:, 0 * hp:1 * hp])      # PyTorch gate order: i, f, g, o
        f_g = _sigmoid(g[:, 1 * hp:2 * hp])      # each slice = whole 128-lane vregs
        g_g = jnp.tanh(g[:, 2 * hp:3 * hp])
        o_g = _sigmoid(g[:, 3 * hp:4 * hp])
        c_new = f_g * c + i_g * g_g
        h_new = o_g * jnp.tanh(c_new)
        return h_new, c_new

    h, c = lax.fori_loop(0, ts, step, (h_ref[...], c_ref[...]), unroll=True)
    h_ref[...] = h
    c_ref[...] = c

    @pl.when(t_chunk == pl.num_programs(1) - 1)
    def _predict():
        preds = jnp.sum(h * wp_ref[...], axis=-1, keepdims=True) + bp_ref[...]
        o_ref[...] = preds.astype(o_ref.dtype)


# ------------------------------ wrapper ------------------------------
def lstm_discriminator_pallas(tokens, params, *, time_chunk_cap=32):
    B, S = tokens.shape
    emb = params["emb"].astype(jnp.float32)
    V, E = emb.shape
    G, H = params["w_hh"].shape
    assert G == 4 * H

    Hp = _round_up(H, 128)              # lane-aligned hidden size
    Bp = _round_up(B, 8)                # sublane-aligned batch
    BB = math.gcd(Bp, 128)              # batch rows per grid block (>= 8)
    nb = Bp // BB
    Ts = 1                              # largest divisor of S <= time_chunk_cap
    for d in range(1, min(S, time_chunk_cap) + 1):
        if S % d == 0:
            Ts = d
    nt = S // Ts
    G4p = 4 * Hp

    # ---- fold Embedding + W_ih + (b_ih + b_hh) into a per-token gate table ----
    b_fused = (params["b_ih"] + params["b_hh"]).astype(jnp.float32)
    gate_tab = emb @ params["w_ih"].T.astype(jnp.float32) + b_fused        # (V, 4H)
    gate_tab = jnp.pad(gate_tab.reshape(V, 4, H),
                       ((0, 0), (0, 0), (0, Hp - H))).reshape(V, G4p)      # (V, 4Hp)

    # per-token input contribution, time-major; padded batch rows use pad token 0
    tok = jnp.zeros((Bp, S), jnp.int32).at[:B].set(tokens.astype(jnp.int32))
    xg = jnp.take(gate_tab, tok.T, axis=0)                                 # (S, Bp, 4Hp)

    # ---- pad recurrent / predictor weights (zeros keep padded units exactly 0) ----
    whh = jnp.pad(params["w_hh"].T.astype(jnp.float32).reshape(H, 4, H),
                  ((0, Hp - H), (0, 0), (0, Hp - H))).reshape(Hp, G4p)     # (Hp, 4Hp)
    wp_row = jnp.zeros((1, Hp), jnp.float32).at[0, :H].set(
        params["w_p"].astype(jnp.float32)[0])                              # (1, Hp)
    bp = params["b_p"].astype(jnp.float32).reshape(1, 1)

    flops = 2 * S * Bp * Hp * G4p + 10 * S * Bp * G4p + 2 * Bp * Hp
    cost = pl.CostEstimate(
        flops=flops,
        transcendentals=5 * S * Bp * Hp,
        bytes_accessed=4 * (xg.size + whh.size + wp_row.size + bp.size + Bp))

    out = pl.pallas_call(
        functools.partial(lstm_discriminator_kernel, Hp, Ts),
        out_shape=jax.ShapeDtypeStruct((Bp, 1), jnp.float32),
        grid_spec=pltpu.PrefetchScalarGridSpec(
            num_scalar_prefetch=0,
            grid=(nb, nt),                                   # (batch blocks, time chunks)
            in_specs=[
                pl.BlockSpec((Ts, BB, G4p), lambda b, t: (t, b, 0)),   # streamed xg chunk
                pl.BlockSpec((Hp, G4p), lambda b, t: (0, 0)),          # W_hh^T (resident)
                pl.BlockSpec((1, Hp), lambda b, t: (0, 0)),            # predictor weight
                pl.BlockSpec((1, 1), lambda b, t: (0, 0)),             # predictor bias
            ],
            out_specs=pl.BlockSpec((BB, 1), lambda b, t: (b, 0)),
            scratch_shapes=[pltpu.VMEM((BB, Hp), jnp.float32),         # h state
                            pltpu.VMEM((BB, Hp), jnp.float32)],        # c state
        ),
        compiler_params=pltpu.CompilerParams(
            dimension_semantics=("parallel", "arbitrary"),
            vmem_limit_bytes=32 * 1024 * 1024),
        cost_estimate=cost,
    )(xg, whh, wp_row, bp)
    return out[:B]


# --------------------------- parameter init ---------------------------
def init_params(key, vocab_size, embedding_size, hidden_size):
    ks = jax.random.split(key, 7)
    bound = 1.0 / math.sqrt(hidden_size)
    emb = jax.random.normal(ks[0], (vocab_size, embedding_size), jnp.float32)
    emb = emb.at[0].set(0.0)                              # padding_idx=0
    u = lambda k, shape: jax.random.uniform(k, shape, jnp.float32, -bound, bound)
    return dict(
        emb=emb,
        w_ih=u(ks[1], (4 * hidden_size, embedding_size)),  # PyTorch layout (4H, E)
        w_hh=u(ks[2], (4 * hidden_size, hidden_size)),     # (4H, H)
        b_ih=u(ks[3], (4 * hidden_size,)),
        b_hh=u(ks[4], (4 * hidden_size,)),
        w_p=u(ks[5], (1, hidden_size)),                    # Linear(H, 1)
        b_p=u(ks[6], (1,)),
    )


# --------------------------- pure-JAX reference ---------------------------
def ref_forward(tokens, params):
    B, S = tokens.shape
    H = params["w_hh"].shape[1]
    emb = params["emb"][tokens]                   # (B, S, E)
    w_ih = params["w_ih"].T                       # (E, 4H)
    w_hh = params["w_hh"].T                       # (H, 4H)
    b = params["b_ih"] + params["b_hh"]
    h = jnp.zeros((B, H), jnp.float32)
    c = jnp.zeros((B, H), jnp.float32)
    for t in range(S):
        g = emb[:, t, :] @ w_ih + h @ w_hh + b
        i = jax.nn.sigmoid(g[:, 0 * H:1 * H])
        f = jax.nn.sigmoid(g[:, 1 * H:2 * H])
        gg = jnp.tanh(g[:, 2 * H:3 * H])
        o = jax.nn.sigmoid(g[:, 3 * H:4 * H])
        c = f * c + i * gg
        h = o * jnp.tanh(c)
    return h @ params["w_p"].T + params["b_p"]


# ------------------------------- main -------------------------------
if __name__ == "__main__":
    B, S, H, E, V = 2, 8, 32, 32, 64   # batch, seq, hidden, embedding, vocab

    key = jax.random.PRNGKey(0)
    kt, kp = jax.random.split(key)
    tokens = jax.random.randint(kt, (B, S), 0, V, dtype=jnp.int32)
    params = init_params(kp, V, E, H)

    out = lstm_discriminator_pallas(tokens, params)
    out = jax.block_until_ready(out)

    ref = ref_forward(tokens, params)
    assert out.shape == (B, 1)
    assert jnp.allclose(out, ref, atol=2e-3, rtol=2e-3), (
        f"max abs err {jnp.max(jnp.abs(out - ref))}")
    print("KERNEL_OK")
</pallas_src>

<mosaic_0001>
module attributes {stable_mosaic.version = 11 : i64} {
  func.func @lstm_discriminator_kernel(%arg0: i32, %arg1: i32, %arg2: memref<8x8x512xf32, #tpu.memory_space<vmem>>, %arg3: memref<128x512xf32, #tpu.memory_space<vmem>>, %arg4: memref<1x128xf32, #tpu.memory_space<vmem>>, %arg5: memref<1x1xf32, #tpu.memory_space<vmem>>, %arg6: memref<8x1xf32, #tpu.memory_space<vmem>>, %arg7: memref<8x128xf32, #tpu.memory_space<vmem>>, %arg8: memref<8x128xf32, #tpu.memory_space<vmem>>) attributes {dimension_semantics = [#tpu.dimension_semantics<parallel>, #tpu.dimension_semantics<arbitrary>], iteration_bounds = array<i64: 1, 1>, scalar_prefetch = 0 : i64, scratch_operands = 2 : i64, tpu.core_type = #tpu.core_type<tc>, window_params = [{transform_indices = @transform_0, window_bounds = array<i64: 8, 8, 512>}, {pipeline_mode = #tpu.pipeline_mode<synchronous>, transform_indices = @transform_1, window_bounds = array<i64: 128, 512>}, {pipeline_mode = #tpu.pipeline_mode<synchronous>, transform_indices = @transform_2, window_bounds = array<i64: 1, 128>}, {pipeline_mode = #tpu.pipeline_mode<synchronous>, transform_indices = @transform_3, window_bounds = array<i64: 1, 1>}, {transform_indices = @transform_4, window_bounds = array<i64: 8, 1>}]} {
    %c0_i32 = arith.constant 0 : i32
    %0 = arith.cmpi eq, %arg1, %c0_i32 : i32
    %1 = arith.extui %0 : i1 to i32
    %c0_i32_0 = arith.constant 0 : i32
    %2 = arith.cmpi ne, %1, %c0_i32_0 : i32
    scf.if %2 {
      %cst_122 = arith.constant 0.000000e+00 : f32
      %306 = vector.broadcast %cst_122 : f32 to vector<8x128xf32>
      %c0_123 = arith.constant 0 : index
      %c0_124 = arith.constant 0 : index
      %307 = vector.load %arg7[%c0_123, %c0_124] : memref<8x128xf32, #tpu.memory_space<vmem>>, vector<8x128xf32>
      tpu.vector_store %arg7[%c0_123, %c0_124], %306 {strides = array<i32>} : memref<8x128xf32, #tpu.memory_space<vmem>>, vector<8x128xf32>,
      %cst_125 = arith.constant 0.000000e+00 : f32
      %308 = vector.broadcast %cst_125 : f32 to vector<8x128xf32>
      %c0_126 = arith.constant 0 : index
      %c0_127 = arith.constant 0 : index
      %309 = vector.load %arg8[%c0_126, %c0_127] : memref<8x128xf32, #tpu.memory_space<vmem>>, vector<8x128xf32>
      tpu.vector_store %arg8[%c0_126, %c0_127], %308 {strides = array<i32>} : memref<8x128xf32, #tpu.memory_space<vmem>>, vector<8x128xf32>,
    } else {
    }
    %c0 = arith.constant 0 : index
    %c0_1 = arith.constant 0 : index
    %3 = vector.load %arg7[%c0, %c0_1] : memref<8x128xf32, #tpu.memory_space<vmem>>, vector<8x128xf32>
    %c0_2 = arith.constant 0 : index
    %c0_3 = arith.constant 0 : index
    %4 = vector.load %arg8[%c0_2, %c0_3] : memref<8x128xf32, #tpu.memory_space<vmem>>, vector<8x128xf32>
    %c0_i32_4 = arith.constant 0 : i32
    %5 = arith.index_cast %c0_i32_4 : i32 to index
    %c0_5 = arith.constant 0 : index
    %c0_6 = arith.constant 0 : index
    %6 = vector.load %arg2[%5, %c0_5, %c0_6] : memref<8x8x512xf32, #tpu.memory_space<vmem>>, vector<1x8x512xf32>
    %7 = vector.shape_cast %6 : vector<1x8x512xf32> to vector<8x512xf32>
    %c0_7 = arith.constant 0 : index
    %c0_8 = arith.constant 0 : index
    %8 = vector.load %arg3[%c0_7, %c0_8] : memref<128x512xf32, #tpu.memory_space<vmem>>, vector<128x512xf32>
    %cst = arith.constant dense<0.000000e+00> : vector<8x512xf32>
    %9 = tpu.matmul %3, %8, %cst {dimension_numbers = #tpu.dot_dimension_numbers<[1], [0], [0], [1], [0, 0, 1, 1], [], []>} : vector<8x128xf32>, vector<128x512xf32>, vector<8x512xf32> -> vector<8x512xf32>
    %10 = arith.addf %7, %9 : vector<8x512xf32>
    %11 = vector.extract_strided_slice %10 {offsets = [0, 0], sizes = [8, 128], strides = [1, 1]} : vector<8x512xf32> to vector<8x128xf32>
    %cst_9 = arith.constant 5.000000e-01 : f32
    %12 = vector.broadcast %cst_9 : f32 to vector<8x128xf32>
    %13 = arith.mulf %12, %11 : vector<8x128xf32>
    %14 = math.tanh %13 : vector<8x128xf32>
    %cst_10 = arith.constant 1.000000e+00 : f32
    %15 = vector.broadcast %cst_10 : f32 to vector<8x128xf32>
    %16 = arith.addf %14, %15 : vector<8x128xf32>
    %cst_11 = arith.constant 5.000000e-01 : f32
    %17 = vector.broadcast %cst_11 : f32 to vector<8x128xf32>
    %18 = arith.mulf %17, %16 : vector<8x128xf32>
    %19 = vector.extract_strided_slice %10 {offsets = [0, 128], sizes = [8, 128], strides = [1, 1]} : vector<8x512xf32> to vector<8x128xf32>
    %cst_12 = arith.constant 5.000000e-01 : f32
    %20 = vector.broadcast %cst_12 : f32 to vector<8x128xf32>
    %21 = arith.mulf %20, %19 : vector<8x128xf32>
    %22 = math.tanh %21 : vector<8x128xf32>
    %cst_13 = arith.constant 1.000000e+00 : f32
    %23 = vector.broadcast %cst_13 : f32 to vector<8x128xf32>
    %24 = arith.addf %22, %23 : vector<8x128xf32>
    %cst_14 = arith.constant 5.000000e-01 : f32
    %25 = vector.broadcast %cst_14 : f32 to vector<8x128xf32>
    %26 = arith.mulf %25, %24 : vector<8x128xf32>
    %27 = vector.extract_strided_slice %10 {offsets = [0, 256], sizes = [8, 128], strides = [1, 1]} : vector<8x512xf32> to vector<8x128xf32>
    %28 = math.tanh %27 : vector<8x128xf32>
    %29 = vector.extract_strided_slice %10 {offsets = [0, 384], sizes = [8, 128], strides = [1, 1]} : vector<8x512xf32> to vector<8x128xf32>
    %cst_15 = arith.constant 5.000000e-01 : f32
    %30 = vector.broadcast %cst_15 : f32 to vector<8x128xf32>
    %31 = arith.mulf %30, %29 : vector<8x128xf32>
    %32 = math.tanh %31 : vector<8x128xf32>
    %cst_16 = arith.constant 1.000000e+00 : f32
    %33 = vector.broadcast %cst_16 : f32 to vector<8x128xf32>
    %34 = arith.addf %32, %33 : vector<8x128xf32>
    %cst_17 = arith.constant 5.000000e-01 : f32
    %35 = vector.broadcast %cst_17 : f32 to vector<8x128xf32>
    %36 = arith.mulf %35, %34 : vector<8x128xf32>
    %37 = arith.mulf %26, %4 : vector<8x128xf32>
    %38 = arith.mulf %18, %28 : vector<8x128xf32>
    %39 = arith.addf %37, %38 : vector<8x128xf32>
    %40 = math.tanh %39 : vector<8x128xf32>
    %41 = arith.mulf %36, %40 : vector<8x128xf32>
    %c1_i32 = arith.constant 1 : i32
    %42 = arith.index_cast %c1_i32 : i32 to index
    %c0_18 = arith.constant 0 : index
    %c0_19 = arith.constant 0 : index
    %43 = vector.load %arg2[%42, %c0_18, %c0_19] : memref<8x8x512xf32, #tpu.memory_space<vmem>>, vector<1x8x512xf32>
    %44 = vector.shape_cast %43 : vector<1x8x512xf32> to vector<8x512xf32>
    %c0_20 = arith.constant 0 : index
    %c0_21 = arith.constant 0 : index
    %45 = vector.load %arg3[%c0_20, %c0_21] : memref<128x512xf32, #tpu.memory_space<vmem>>, vector<128x512xf32>
    %cst_22 = arith.constant dense<0.000000e+00> : vector<8x512xf32>
    %46 = tpu.matmul %41, %45, %cst_22 {dimension_numbers = #tpu.dot_dimension_numbers<[1], [0], [0], [1], [0, 0, 1, 1], [], []>} : vector<8x128xf32>, vector<128x512xf32>, vector<8x512xf32> -> vector<8x512xf32>
    %47 = arith.addf %44, %46 : vector<8x512xf32>
    %48 = vector.extract_strided_slice %47 {offsets = [0, 0], sizes = [8, 128], strides = [1, 1]} : vector<8x512xf32> to vector<8x128xf32>
    %cst_23 = arith.constant 5.000000e-01 : f32
    %49 = vector.broadcast %cst_23 : f32 to vector<8x128xf32>
    %50 = arith.mulf %49, %48 : vector<8x128xf32>
    %51 = math.tanh %50 : vector<8x128xf32>
    %cst_24 = arith.constant 1.000000e+00 : f32
    %52 = vector.broadcast %cst_24 : f32 to vector<8x128xf32>
    %53 = arith.addf %51, %52 : vector<8x128xf32>
    %cst_25 = arith.constant 5.000000e-01 : f32
    %54 = vector.broadcast %cst_25 : f32 to vector<8x128xf32>
    %55 = arith.mulf %54, %53 : vector<8x128xf32>
    %56 = vector.extract_strided_slice %47 {offsets = [0, 128], sizes = [8, 128], strides = [1, 1]} : vector<8x512xf32> to vector<8x128xf32>
    %cst_26 = arith.constant 5.000000e-01 : f32
    %57 = vector.broadcast %cst_26 : f32 to vector<8x128xf32>
    %58 = arith.mulf %57, %56 : vector<8x128xf32>
    %59 = math.tanh %58 : vector<8x128xf32>
    %cst_27 = arith.constant 1.000000e+00 : f32
    %60 = vector.broadcast %cst_27 : f32 to vector<8x128xf32>
    %61 = arith.addf %59, %60 : vector<8x128xf32>
    %cst_28 = arith.constant 5.000000e-01 : f32
    %62 = vector.broadcast %cst_28 : f32 to vector<8x128xf32>
    %63 = arith.mulf %62, %61 : vector<8x128xf32>
    %64 = vector.extract_strided_slice %47 {offsets = [0, 256], sizes = [8, 128], strides = [1, 1]} : vector<8x512xf32> to vector<8x128xf32>
    %65 = math.tanh %64 : vector<8x128xf32>
    %66 = vector.extract_strided_slice %47 {offsets = [0, 384], sizes = [8, 128], strides = [1, 1]} : vector<8x512xf32> to vector<8x128xf32>
    %cst_29 = arith.constant 5.000000e-01 : f32
    %67 = vector.broadcast %cst_29 : f32 to vector<8x128xf32>
    %68 = arith.mulf %67, %66 : vector<8x128xf32>
    %69 = math.tanh %68 : vector<8x128xf32>
    %cst_30 = arith.constant 1.000000e+00 : f32
    %70 = vector.broadcast %cst_30 : f32 to vector<8x128xf32>
    %71 = arith.addf %69, %70 : vector<8x128xf32>
    %cst_31 = arith.constant 5.000000e-01 : f32
    %72 = vector.broadcast %cst_31 : f32 to vector<8x128xf32>
    %73 = arith.mulf %72, %71 : vector<8x128xf32>
    %74 = arith.mulf %63, %39 : vector<8x128xf32>
    %75 = arith.mulf %55, %65 : vector<8x128xf32>
    %76 = arith.addf %74, %75 : vector<8x128xf32>
    %77 = math.tanh %76 : vector<8x128xf32>
    %78 = arith.mulf %73, %77 : vector<8x128xf32>
    %c2_i32 = arith.constant 2 : i32
    %79 = arith.index_cast %c2_i32 : i32 to index
    %c0_32 = arith.constant 0 : index
    %c0_33 = arith.constant 0 : index
    %80 = vector.load %arg2[%79, %c0_32, %c0_33] : memref<8x8x512xf32, #tpu.memory_space<vmem>>, vector<1x8x512xf32>
    %81 = vector.shape_cast %80 : vector<1x8x512xf32> to vector<8x512xf32>
    %c0_34 = arith.constant 0 : index
    %c0_35 = arith.constant 0 : index
    %82 = vector.load %arg3[%c0_34, %c0_35] : memref<128x512xf32, #tpu.memory_space<vmem>>, vector<128x512xf32>
    %cst_36 = arith.constant dense<0.000000e+00> : vector<8x512xf32>
    %83 = tpu.matmul %78, %82, %cst_36 {dimension_numbers = #tpu.dot_dimension_numbers<[1], [0], [0], [1], [0, 0, 1, 1], [], []>} : vector<8x128xf32>, vector<128x512xf32>, vector<8x512xf32> -> vector<8x512xf32>
    %84 = arith.addf %81, %83 : vector<8x512xf32>
    %85 = vector.extract_strided_slice %84 {offsets = [0, 0], sizes = [8, 128], strides = [1, 1]} : vector<8x512xf32> to vector<8x128xf32>
    %cst_37 = arith.constant 5.000000e-01 : f32
    %86 = vector.broadcast %cst_37 : f32 to vector<8x128xf32>
    %87 = arith.mulf %86, %85 : vector<8x128xf32>
    %88 = math.tanh %87 : vector<8x128xf32>
    %cst_38 = arith.constant 1.000000e+00 : f32
    %89 = vector.broadcast %cst_38 : f32 to vector<8x128xf32>
    %90 = arith.addf %88, %89 : vector<8x128xf32>
    %cst_39 = arith.constant 5.000000e-01 : f32
    %91 = vector.broadcast %cst_39 : f32 to vector<8x128xf32>
    %92 = arith.mulf %91, %90 : vector<8x128xf32>
    %93 = vector.extract_strided_slice %84 {offsets = [0, 128], sizes = [8, 128], strides = [1, 1]} : vector<8x512xf32> to vector<8x128xf32>
    %cst_40 = arith.constant 5.000000e-01 : f32
    %94 = vector.broadcast %cst_40 : f32 to vector<8x128xf32>
    %95 = arith.mulf %94, %93 : vector<8x128xf32>
    %96 = math.tanh %95 : vector<8x128xf32>
    %cst_41 = arith.constant 1.000000e+00 : f32
    %97 = vector.broadcast %cst_41 : f32 to vector<8x128xf32>
    %98 = arith.addf %96, %97 : vector<8x128xf32>
    %cst_42 = arith.constant 5.000000e-01 : f32
    %99 = vector.broadcast %cst_42 : f32 to vector<8x128xf32>
    %100 = arith.mulf %99, %98 : vector<8x128xf32>
    %101 = vector.extract_strided_slice %84 {offsets = [0, 256], sizes = [8, 128], strides = [1, 1]} : vector<8x512xf32> to vector<8x128xf32>
    %102 = math.tanh %101 : vector<8x128xf32>
    %103 = vector.extract_strided_slice %84 {offsets = [0, 384], sizes = [8, 128], strides = [1, 1]} : vector<8x512xf32> to vector<8x128xf32>
    %cst_43 = arith.constant 5.000000e-01 : f32
    %104 = vector.broadcast %cst_43 : f32 to vector<8x128xf32>
    %105 = arith.mulf %104, %103 : vector<8x128xf32>
    %106 = math.tanh %105 : vector<8x128xf32>
    %cst_44 = arith.constant 1.000000e+00 : f32
    %107 = vector.broadcast %cst_44 : f32 to vector<8x128xf32>
    %108 = arith.addf %106, %107 : vector<8x128xf32>
    %cst_45 = arith.constant 5.000000e-01 : f32
    %109 = vector.broadcast %cst_45 : f32 to vector<8x128xf32>
    %110 = arith.mulf %109, %108 : vector<8x128xf32>
    %111 = arith.mulf %100, %76 : vector<8x128xf32>
    %112 = arith.mulf %92, %102 : vector<8x128xf32>
    %113 = arith.addf %111, %112 : vector<8x128xf32>
    %114 = math.tanh %113 : vector<8x128xf32>
    %115 = arith.mulf %110, %114 : vector<8x128xf32>
    %c3_i32 = arith.constant 3 : i32
    %116 = arith.index_cast %c3_i32 : i32 to index
    %c0_46 = arith.constant 0 : index
    %c0_47 = arith.constant 0 : index
    %117 = vector.load %arg2[%116, %c0_46, %c0_47] : memref<8x8x512xf32, #tpu.memory_space<vmem>>, vector<1x8x512xf32>
    %118 = vector.shape_cast %117 : vector<1x8x512xf32> to vector<8x512xf32>
    %c0_48 = arith.constant 0 : index
    %c0_49 = arith.constant 0 : index
    %119 = vector.load %arg3[%c0_48, %c0_49] : memref<128x512xf32, #tpu.memory_space<vmem>>, vector<128x512xf32>
    %cst_50 = arith.constant dense<0.000000e+00> : vector<8x512xf32>
    %120 = tpu.matmul %115, %119, %cst_50 {dimension_numbers = #tpu.dot_dimension_numbers<[1], [0], [0], [1], [0, 0, 1, 1], [], []>} : vector<8x128xf32>, vector<128x512xf32>, vector<8x512xf32> -> vector<8x512xf32>
    %121 = arith.addf %118, %120 : vector<8x512xf32>
    %122 = vector.extract_strided_slice %121 {offsets = [0, 0], sizes = [8, 128], strides = [1, 1]} : vector<8x512xf32> to vector<8x128xf32>
    %cst_51 = arith.constant 5.000000e-01 : f32
    %123 = vector.broadcast %cst_51 : f32 to vector<8x128xf32>
    %124 = arith.mulf %123, %122 : vector<8x128xf32>
    %125 = math.tanh %124 : vector<8x128xf32>
    %cst_52 = arith.constant 1.000000e+00 : f32
    %126 = vector.broadcast %cst_52 : f32 to vector<8x128xf32>
    %127 = arith.addf %125, %126 : vector<8x128xf32>
    %cst_53 = arith.constant 5.000000e-01 : f32
    %128 = vector.broadcast %cst_53 : f32 to vector<8x128xf32>
    %129 = arith.mulf %128, %127 : vector<8x128xf32>
    %130 = vector.extract_strided_slice %121 {offsets = [0, 128], sizes = [8, 128], strides = [1, 1]} : vector<8x512xf32> to vector<8x128xf32>
    %cst_54 = arith.constant 5.000000e-01 : f32
    %131 = vector.broadcast %cst_54 : f32 to vector<8x128xf32>
    %132 = arith.mulf %131, %130 : vector<8x128xf32>
    %133 = math.tanh %132 : vector<8x128xf32>
    %cst_55 = arith.constant 1.000000e+00 : f32
    %134 = vector.broadcast %cst_55 : f32 to vector<8x128xf32>
    %135 = arith.addf %133, %134 : vector<8x128xf32>
    %cst_56 = arith.constant 5.000000e-01 : f32
    %136 = vector.broadcast %cst_56 : f32 to vector<8x128xf32>
    %137 = arith.mulf %136, %135 : vector<8x128xf32>
    %138 = vector.extract_strided_slice %121 {offsets = [0, 256], sizes = [8, 128], strides = [1, 1]} : vector<8x512xf32> to vector<8x128xf32>
    %139 = math.tanh %138 : vector<8x128xf32>
    %140 = vector.extract_strided_slice %121 {offsets = [0, 384], sizes = [8, 128], strides = [1, 1]} : vector<8x512xf32> to vector<8x128xf32>
    %cst_57 = arith.constant 5.000000e-01 : f32
    %141 = vector.broadcast %cst_57 : f32 to vector<8x128xf32>
    %142 = arith.mulf %141, %140 : vector<8x128xf32>
    %143 = math.tanh %142 : vector<8x128xf32>
    %cst_58 = arith.constant 1.000000e+00 : f32
    %144 = vector.broadcast %cst_58 : f32 to vector<8x128xf32>
    %145 = arith.addf %143, %144 : vector<8x128xf32>
    %cst_59 = arith.constant 5.000000e-01 : f32
    %146 = vector.broadcast %cst_59 : f32 to vector<8x128xf32>
    %147 = arith.mulf %146, %145 : vector<8x128xf32>
    %148 = arith.mulf %137, %113 : vector<8x128xf32>
    %149 = arith.mulf %129, %139 : vector<8x128xf32>
    %150 = arith.addf %148, %149 : vector<8x128xf32>
    %151 = math.tanh %150 : vector<8x128xf32>
    %152 = arith.mulf %147, %151 : vector<8x128xf32>
    %c4_i32 = arith.constant 4 : i32
    %153 = arith.index_cast %c4_i32 : i32 to index
    %c0_60 = arith.constant 0 : index
    %c0_61 = arith.constant 0 : index
    %154 = vector.load %arg2[%153, %c0_60, %c0_61] : memref<8x8x512xf32, #tpu.memory_space<vmem>>, vector<1x8x512xf32>
    %155 = vector.shape_cast %154 : vector<1x8x512xf32> to vector<8x512xf32>
    %c0_62 = arith.constant 0 : index
    %c0_63 = arith.constant 0 : index
    %156 = vector.load %arg3[%c0_62, %c0_63] : memref<128x512xf32, #tpu.memory_space<vmem>>, vector<128x512xf32>
    %cst_64 = arith.constant dense<0.000000e+00> : vector<8x512xf32>
    %157 = tpu.matmul %152, %156, %cst_64 {dimension_numbers = #tpu.dot_dimension_numbers<[1], [0], [0], [1], [0, 0, 1, 1], [], []>} : vector<8x128xf32>, vector<128x512xf32>, vector<8x512xf32> -> vector<8x512xf32>
    %158 = arith.addf %155, %157 : vector<8x512xf32>
    %159 = vector.extract_strided_slice %158 {offsets = [0, 0], sizes = [8, 128], strides = [1, 1]} : vector<8x512xf32> to vector<8x128xf32>
    %cst_65 = arith.constant 5.000000e-01 : f32
    %160 = vector.broadcast %cst_65 : f32 to vector<8x128xf32>
    %161 = arith.mulf %160, %159 : vector<8x128xf32>
    %162 = math.tanh %161 : vector<8x128xf32>
    %cst_66 = arith.constant 1.000000e+00 : f32
    %163 = vector.broadcast %cst_66 : f32 to vector<8x128xf32>
    %164 = arith.addf %162, %163 : vector<8x128xf32>
    %cst_67 = arith.constant 5.000000e-01 : f32
    %165 = vector.broadcast %cst_67 : f32 to vector<8x128xf32>
    %166 = arith.mulf %165, %164 : vector<8x128xf32>
    %167 = vector.extract_strided_slice %158 {offsets = [0, 128], sizes = [8, 128], strides = [1, 1]} : vector<8x512xf32> to vector<8x128xf32>
    %cst_68 = arith.constant 5.000000e-01 : f32
    %168 = vector.broadcast %cst_68 : f32 to vector<8x128xf32>
    %169 = arith.mulf %168, %167 : vector<8x128xf32>
    %170 = math.tanh %169 : vector<8x128xf32>
    %cst_69 = arith.constant 1.000000e+00 : f32
    %171 = vector.broadcast %cst_69 : f32 to vector<8x128xf32>
    %172 = arith.addf %170, %171 : vector<8x128xf32>
    %cst_70 = arith.constant 5.000000e-01 : f32
    %173 = vector.broadcast %cst_70 : f32 to vector<8x128xf32>
    %174 = arith.mulf %173, %172 : vector<8x128xf32>
    %175 = vector.extract_strided_slice %158 {offsets = [0, 256], sizes = [8, 128], strides = [1, 1]} : vector<8x512xf32> to vector<8x128xf32>
    %176 = math.tanh %175 : vector<8x128xf32>
    %177 = vector.extract_strided_slice %158 {offsets = [0, 384], sizes = [8, 128], strides = [1, 1]} : vector<8x512xf32> to vector<8x128xf32>
    %cst_71 = arith.constant 5.000000e-01 : f32
    %178 = vector.broadcast %cst_71 : f32 to vector<8x128xf32>
    %179 = arith.mulf %178, %177 : vector<8x128xf32>
    %180 = math.tanh %179 : vector<8x128xf32>
    %cst_72 = arith.constant 1.000000e+00 : f32
    %181 = vector.broadcast %cst_72 : f32 to vector<8x128xf32>
    %182 = arith.addf %180, %181 : vector<8x128xf32>
    %cst_73 = arith.constant 5.000000e-01 : f32
    %183 = vector.broadcast %cst_73 : f32 to vector<8x128xf32>
    %184 = arith.mulf %183, %182 : vector<8x128xf32>
    %185 = arith.mulf %174, %150 : vector<8x128xf32>
    %186 = arith.mulf %166, %176 : vector<8x128xf32>
    %187 = arith.addf %185, %186 : vector<8x128xf32>
    %188 = math.tanh %187 : vector<8x128xf32>
    %189 = arith.mulf %184, %188 : vector<8x128xf32>
    %c5_i32 = arith.constant 5 : i32
    %190 = arith.index_cast %c5_i32 : i32 to index
    %c0_74 = arith.constant 0 : index
    %c0_75 = arith.constant 0 : index
    %191 = vector.load %arg2[%190, %c0_74, %c0_75] : memref<8x8x512xf32, #tpu.memory_space<vmem>>, vector<1x8x512xf32>
    %192 = vector.shape_cast %191 : vector<1x8x512xf32> to vector<8x512xf32>
    %c0_76 = arith.constant 0 : index
    %c0_77 = arith.constant 0 : index
    %193 = vector.load %arg3[%c0_76, %c0_77] : memref<128x512xf32, #tpu.memory_space<vmem>>, vector<128x512xf32>
    %cst_78 = arith.constant dense<0.000000e+00> : vector<8x512xf32>
    %194 = tpu.matmul %189, %193, %cst_78 {dimension_numbers = #tpu.dot_dimension_numbers<[1], [0], [0], [1], [0, 0, 1, 1], [], []>} : vector<8x128xf32>, vector<128x512xf32>, vector<8x512xf32> -> vector<8x512xf32>
    %195 = arith.addf %192, %194 : vector<8x512xf32>
    %196 = vector.extract_strided_slice %195 {offsets = [0, 0], sizes = [8, 128], strides = [1, 1]} : vector<8x512xf32> to vector<8x128xf32>
    %cst_79 = arith.constant 5.000000e-01 : f32
    %197 = vector.broadcast %cst_79 : f32 to vector<8x128xf32>
    %198 = arith.mulf %197, %196 : vector<8x128xf32>
    %199 = math.tanh %198 : vector<8x128xf32>
    %cst_80 = arith.constant 1.000000e+00 : f32
    %200 = vector.broadcast %cst_80 : f32 to vector<8x128xf32>
    %201 = arith.addf %199, %200 : vector<8x128xf32>
    %cst_81 = arith.constant 5.000000e-01 : f32
    %202 = vector.broadcast %cst_81 : f32 to vector<8x128xf32>
    %203 = arith.mulf %202, %201 : vector<8x128xf32>
    %204 = vector.extract_strided_slice %195 {offsets = [0, 128], sizes = [8, 128], strides = [1, 1]} : vector<8x512xf32> to vector<8x128xf32>
    %cst_82 = arith.constant 5.000000e-01 : f32
    %205 = vector.broadcast %cst_82 : f32 to vector<8x128xf32>
    %206 = arith.mulf %205, %204 : vector<8x128xf32>
    %207 = math.tanh %206 : vector<8x128xf32>
    %cst_83 = arith.constant 1.000000e+00 : f32
    %208 = vector.broadcast %cst_83 : f32 to vector<8x128xf32>
    %209 = arith.addf %207, %208 : vector<8x128xf32>
    %cst_84 = arith.constant 5.000000e-01 : f32
    %210 = vector.broadcast %cst_84 : f32 to vector<8x128xf32>
    %211 = arith.mulf %210, %209 : vector<8x128xf32>
    %212 = vector.extract_strided_slice %195 {offsets = [0, 256], sizes = [8, 128], strides = [1, 1]} : vector<8x512xf32> to vector<8x128xf32>
    %213 = math.tanh %212 : vector<8x128xf32>
    %214 = vector.extract_strided_slice %195 {offsets = [0, 384], sizes = [8, 128], strides = [1, 1]} : vector<8x512xf32> to vector<8x128xf32>
    %cst_85 = arith.constant 5.000000e-01 : f32
    %215 = vector.broadcast %cst_85 : f32 to vector<8x128xf32>
    %216 = arith.mulf %215, %214 : vector<8x128xf32>
    %217 = math.tanh %216 : vector<8x128xf32>
    %cst_86 = arith.constant 1.000000e+00 : f32
    %218 = vector.broadcast %cst_86 : f32 to vector<8x128xf32>
    %219 = arith.addf %217, %218 : vector<8x128xf32>
    %cst_87 = arith.constant 5.000000e-01 : f32
    %220 = vector.broadcast %cst_87 : f32 to vector<8x128xf32>
    %221 = arith.mulf %220, %219 : vector<8x128xf32>
    %222 = arith.mulf %211, %187 : vector<8x128xf32>
    %223 = arith.mulf %203, %213 : vector<8x128xf32>
    %224 = arith.addf %222, %223 : vector<8x128xf32>
    %225 = math.tanh %224 : vector<8x128xf32>
    %226 = arith.mulf %221, %225 : vector<8x128xf32>
    %c6_i32 = arith.constant 6 : i32
    %227 = arith.index_cast %c6_i32 : i32 to index
    %c0_88 = arith.constant 0 : index
    %c0_89 = arith.constant 0 : index
    %228 = vector.load %arg2[%227, %c0_88, %c0_89] : memref<8x8x512xf32, #tpu.memory_space<vmem>>, vector<1x8x512xf32>
    %229 = vector.shape_cast %228 : vector<1x8x512xf32> to vector<8x512xf32>
    %c0_90 = arith.constant 0 : index
    %c0_91 = arith.constant 0 : index
    %230 = vector.load %arg3[%c0_90, %c0_91] : memref<128x512xf32, #tpu.memory_space<vmem>>, vector<128x512xf32>
    %cst_92 = arith.constant dense<0.000000e+00> : vector<8x512xf32>
    %231 = tpu.matmul %226, %230, %cst_92 {dimension_numbers = #tpu.dot_dimension_numbers<[1], [0], [0], [1], [0, 0, 1, 1], [], []>} : vector<8x128xf32>, vector<128x512xf32>, vector<8x512xf32> -> vector<8x512xf32>
    %232 = arith.addf %229, %231 : vector<8x512xf32>
    %233 = vector.extract_strided_slice %232 {offsets = [0, 0], sizes = [8, 128], strides = [1, 1]} : vector<8x512xf32> to vector<8x128xf32>
    %cst_93 = arith.constant 5.000000e-01 : f32
    %234 = vector.broadcast %cst_93 : f32 to vector<8x128xf32>
    %235 = arith.mulf %234, %233 : vector<8x128xf32>
    %236 = math.tanh %235 : vector<8x128xf32>
    %cst_94 = arith.constant 1.000000e+00 : f32
    %237 = vector.broadcast %cst_94 : f32 to vector<8x128xf32>
    %238 = arith.addf %236, %237 : vector<8x128xf32>
    %cst_95 = arith.constant 5.000000e-01 : f32
    %239 = vector.broadcast %cst_95 : f32 to vector<8x128xf32>
    %240 = arith.mulf %239, %238 : vector<8x128xf32>
    %241 = vector.extract_strided_slice %232 {offsets = [0, 128], sizes = [8, 128], strides = [1, 1]} : vector<8x512xf32> to vector<8x128xf32>
    %cst_96 = arith.constant 5.000000e-01 : f32
    %242 = vector.broadcast %cst_96 : f32 to vector<8x128xf32>
    %243 = arith.mulf %242, %241 : vector<8x128xf32>
    %244 = math.tanh %243 : vector<8x128xf32>
    %cst_97 = arith.constant 1.000000e+00 : f32
    %245 = vector.broadcast %cst_97 : f32 to vector<8x128xf32>
    %246 = arith.addf %244, %245 : vector<8x128xf32>
    %cst_98 = arith.constant 5.000000e-01 : f32
    %247 = vector.broadcast %cst_98 : f32 to vector<8x128xf32>
    %248 = arith.mulf %247, %246 : vector<8x128xf32>
    %249 = vector.extract_strided_slice %232 {offsets = [0, 256], sizes = [8, 128], strides = [1, 1]} : vector<8x512xf32> to vector<8x128xf32>
    %250 = math.tanh %249 : vector<8x128xf32>
    %251 = vector.extract_strided_slice %232 {offsets = [0, 384], sizes = [8, 128], strides = [1, 1]} : vector<8x512xf32> to vector<8x128xf32>
    %cst_99 = arith.constant 5.000000e-01 : f32
    %252 = vector.broadcast %cst_99 : f32 to vector<8x128xf32>
    %253 = arith.mulf %252, %251 : vector<8x128xf32>
    %254 = math.tanh %253 : vector<8x128xf32>
    %cst_100 = arith.constant 1.000000e+00 : f32
    %255 = vector.broadcast %cst_100 : f32 to vector<8x128xf32>
    %256 = arith.addf %254, %255 : vector<8x128xf32>
    %cst_101 = arith.constant 5.000000e-01 : f32
    %257 = vector.broadcast %cst_101 : f32 to vector<8x128xf32>
    %258 = arith.mulf %257, %256 : vector<8x128xf32>
    %259 = arith.mulf %248, %224 : vector<8x128xf32>
    %260 = arith.mulf %240, %250 : vector<8x128xf32>
    %261 = arith.addf %259, %260 : vector<8x128xf32>
    %262 = math.tanh %261 : vector<8x128xf32>
    %263 = arith.mulf %258, %262 : vector<8x128xf32>
    %c7_i32 = arith.constant 7 : i32
    %264 = arith.index_cast %c7_i32 : i32 to index
    %c0_102 = arith.constant 0 : index
    %c0_103 = arith.constant 0 : index
    %265 = vector.load %arg2[%264, %c0_102, %c0_103] : memref<8x8x512xf32, #tpu.memory_space<vmem>>, vector<1x8x512xf32>
    %266 = vector.shape_cast %265 : vector<1x8x512xf32> to vector<8x512xf32>
    %c0_104 = arith.constant 0 : index
    %c0_105 = arith.constant 0 : index
    %267 = vector.load %arg3[%c0_104, %c0_105] : memref<128x512xf32, #tpu.memory_space<vmem>>, vector<128x512xf32>
    %cst_106 = arith.constant dense<0.000000e+00> : vector<8x512xf32>
    %268 = tpu.matmul %263, %267, %cst_106 {dimension_numbers = #tpu.dot_dimension_numbers<[1], [0], [0], [1], [0, 0, 1, 1], [], []>} : vector<8x128xf32>, vector<128x512xf32>, vector<8x512xf32> -> vector<8x512xf32>
    %269 = arith.addf %266, %268 : vector<8x512xf32>
    %270 = vector.extract_strided_slice %269 {offsets = [0, 0], sizes = [8, 128], strides = [1, 1]} : vector<8x512xf32> to vector<8x128xf32>
    %cst_107 = arith.constant 5.000000e-01 : f32
    %271 = vector.broadcast %cst_107 : f32 to vector<8x128xf32>
    %272 = arith.mulf %271, %270 : vector<8x128xf32>
    %273 = math.tanh %272 : vector<8x128xf32>
    %cst_108 = arith.constant 1.000000e+00 : f32
    %274 = vector.broadcast %cst_108 : f32 to vector<8x128xf32>
    %275 = arith.addf %273, %274 : vector<8x128xf32>
    %cst_109 = arith.constant 5.000000e-01 : f32
    %276 = vector.broadcast %cst_109 : f32 to vector<8x128xf32>
    %277 = arith.mulf %276, %275 : vector<8x128xf32>
    %278 = vector.extract_strided_slice %269 {offsets = [0, 128], sizes = [8, 128], strides = [1, 1]} : vector<8x512xf32> to vector<8x128xf32>
    %cst_110 = arith.constant 5.000000e-01 : f32
    %279 = vector.broadcast %cst_110 : f32 to vector<8x128xf32>
    %280 = arith.mulf %279, %278 : vector<8x128xf32>
    %281 = math.tanh %280 : vector<8x128xf32>
    %cst_111 = arith.constant 1.000000e+00 : f32
    %282 = vector.broadcast %cst_111 : f32 to vector<8x128xf32>
    %283 = arith.addf %281, %282 : vector<8x128xf32>
    %cst_112 = arith.constant 5.000000e-01 : f32
    %284 = vector.broadcast %cst_112 : f32 to vector<8x128xf32>
    %285 = arith.mulf %284, %283 : vector<8x128xf32>
    %286 = vector.extract_strided_slice %269 {offsets = [0, 256], sizes = [8, 128], strides = [1, 1]} : vector<8x512xf32> to vector<8x128xf32>
    %287 = math.tanh %286 : vector<8x128xf32>
    %288 = vector.extract_strided_slice %269 {offsets = [0, 384], sizes = [8, 128], strides = [1, 1]} : vector<8x512xf32> to vector<8x128xf32>
    %cst_113 = arith.constant 5.000000e-01 : f32
    %289 = vector.broadcast %cst_113 : f32 to vector<8x128xf32>
    %290 = arith.mulf %289, %288 : vector<8x128xf32>
    %291 = math.tanh %290 : vector<8x128xf32>
    %cst_114 = arith.constant 1.000000e+00 : f32
    %292 = vector.broadcast %cst_114 : f32 to vector<8x128xf32>
    %293 = arith.addf %291, %292 : vector<8x128xf32>
    %cst_115 = arith.constant 5.000000e-01 : f32
    %294 = vector.broadcast %cst_115 : f32 to vector<8x128xf32>
    %295 = arith.mulf %294, %293 : vector<8x128xf32>
    %296 = arith.mulf %285, %261 : vector<8x128xf32>
    %297 = arith.mulf %277, %287 : vector<8x128xf32>
    %298 = arith.addf %296, %297 : vector<8x128xf32>
    %299 = math.tanh %298 : vector<8x128xf32>
    %300 = arith.mulf %295, %299 : vector<8x128xf32>
    %c8_i32 = arith.constant 8 : i32
    %c0_116 = arith.constant 0 : index
    %c0_117 = arith.constant 0 : index
    %301 = vector.load %arg7[%c0_116, %c0_117] : memref<8x128xf32, #tpu.memory_space<vmem>>, vector<8x128xf32>
    tpu.vector_store %arg7[%c0_116, %c0_117], %300 {strides = array<i32>} : memref<8x128xf32, #tpu.memory_space<vmem>>, vector<8x128xf32>,
    %c0_118 = arith.constant 0 : index
    %c0_119 = arith.constant 0 : index
    %302 = vector.load %arg8[%c0_118, %c0_119] : memref<8x128xf32, #tpu.memory_space<vmem>>, vector<8x128xf32>
    tpu.vector_store %arg8[%c0_118, %c0_119], %298 {strides = array<i32>} : memref<8x128xf32, #tpu.memory_space<vmem>>, vector<8x128xf32>,
    %c0_i32_120 = arith.constant 0 : i32
    %303 = arith.cmpi eq, %arg1, %c0_i32_120 : i32
    %304 = arith.extui %303 : i1 to i32
    %c0_i32_121 = arith.constant 0 : i32
    %305 = arith.cmpi ne, %304, %c0_i32_121 : i32
    scf.if %305 {
      %c0_122 = arith.constant 0 : index
      %c0_123 = arith.constant 0 : index
      %306 = vector.load %arg4[%c0_122, %c0_123] : memref<1x128xf32, #tpu.memory_space<vmem>>, vector<1x128xf32>
      %307 = vector.broadcast %306 : vector<1x128xf32> to vector<8x128xf32>
      %308 = arith.mulf %300, %307 : vector<8x128xf32>
      %cst_124 = arith.constant dense<0.000000e+00> : vector<8xf32>
      %309 = vector.multi_reduction <add>, %308, %cst_124 [1] : vector<8x128xf32> to vector<8xf32>
      %310 = vector.shape_cast %309 : vector<8xf32> to vector<8x1xf32>
      %c0_125 = arith.constant 0 : index
      %c0_126 = arith.constant 0 : index
      %311 = vector.load %arg5[%c0_125, %c0_126] : memref<1x1xf32, #tpu.memory_space<vmem>>, vector<1x1xf32>
      %312 = vector.broadcast %311 : vector<1x1xf32> to vector<8x1xf32>
      %313 = arith.addf %310, %312 : vector<8x1xf32>
      %c0_127 = arith.constant 0 : index
      %c0_128 = arith.constant 0 : index
      %314 = vector.load %arg6[%c0_127, %c0_128] : memref<8x1xf32, #tpu.memory_space<vmem>>, vector<8x1xf32>
      tpu.vector_store %arg6[%c0_127, %c0_128], %313 {strides = array<i32>} : memref<8x1xf32, #tpu.memory_space<vmem>>, vector<8x1xf32>,
    } else {
    }
    return
  }
  func.func @transform_0(%arg0: i32, %arg1: i32) -> (i32, i32, i32) {
    %c0_i32 = arith.constant 0 : i32
    %c0_i32_0 = arith.constant 0 : i32
    return %arg1, %arg0, %c0_i32 : i32, i32, i32
  }
  func.func @transform_1(%arg0: i32, %arg1: i32) -> (i32, i32) {
    %c0_i32 = arith.constant 0 : i32
    %c0_i32_0 = arith.constant 0 : i32
    %c0_i32_1 = arith.constant 0 : i32
    return %c0_i32, %c0_i32_0 : i32, i32
  }
  func.func @transform_2(%arg0: i32, %arg1: i32) -> (i32, i32) {
    %c0_i32 = arith.constant 0 : i32
    %c0_i32_0 = arith.constant 0 : i32
    %c0_i32_1 = arith.constant 0 : i32
    return %c0_i32, %c0_i32_0 : i32, i32
  }
  func.func @transform_3(%arg0: i32, %arg1: i32) -> (i32, i32) {
    %c0_i32 = arith.constant 0 : i32
    %c0_i32_0 = arith.constant 0 : i32
    %c0_i32_1 = arith.constant 0 : i32
    return %c0_i32, %c0_i32_0 : i32, i32
  }
  func.func @transform_4(%arg0: i32, %arg1: i32) -> (i32, i32) {
    %c0_i32 = arith.constant 0 : i32
    %c0_i32_0 = arith.constant 0 : i32
    return %arg0, %c0_i32 : i32, i32
  }
}

</mosaic_0001>

<bundles_post_ra>
// kernel: tpu_custom_call.1
= control target key start
LH: loop header
LB: loop body
LE: loop exit
PB: predicated region body
PF: predicated region fallthrough
CT: control target
= control target key end

     0   :  { %s2573_s0 = inlined_call_operand.hbm [shape: f32[8,8,512], index: 0, kind: input, shape index: {}]   ;;  %s2574_s1 = inlined_call_operand.hbm [shape: f32[128,512], index: 1, kind: input, shape index: {}]   ;;  %s2575_s2 = inlined_call_operand.vmem [shape: f32[1,128], index: 2, kind: input, shape index: {}]   ;;  %s2576_s3 = inlined_call_operand.<no memory space> [shape: f32[1,1], index: 3, kind: input, shape index: {}]   ;;  %s2577_s4 = inlined_call_operand.vmem [shape: f32[8,1], index: 4, kind: output, shape index: {}]  }
   0x1   :  { %v9_v0 = vstv %s2576_s3 }
   0x2   :  { %10 = vst [vmem:[#allocation4] sm:$0x1] %v9_v0 }
   0x3   :  { %11 = vsyncpa [#allocation6], 0 }
   0x4   :  { %12 = vsyncpa [#allocation8], 0  ;;  %s2148_s17 = smov [#allocation5]   ;;  %s2100_s21 = scalar_lea.hbm %s2573_s0, 4096 }
   0x5   :  { %s18_s18 = sshll.u32 %s2148_s17, 4  ;;  %p2101_p0 = scmp.ne.s32.totalorder %s2573_s0, %s2100_s21  ;;  %s19_s18 = int_to_ptr.vmem [resolvable:$true] %s18_s18 }
   0x6   :  { %p2104_p1 = scmp.lt.u32.totalorder %s2100_s21, %s2573_s0 }
   0x8   :  { %p2106_p2 = pnand %p2104_p1, %p2101_p0 }
   0xa   :  { %2109 = shalt.err (!%p2106_p2)
}
   0xb   :  { %s2110_s3 = scalar_lea.vmem %s19_s18, 4096  ;;  %p2115_p4 = scmp.lt.s32.totalorder %s19_s18, %s19_s18 }
   0xc   :  { %p2111_p3 = scmp.ne.s32.totalorder %s19_s18, %s2110_s3  ;;  %p2116_p5 = scmp.lt.s32.totalorder %s2110_s3, %s2110_s3 }
   0xe   :  { %p2117_p6 = por %p2116_p5, %p2115_p4 }
  0x10   :  { %p2118_p7 = pnand %p2117_p6, %p2111_p3 }
  0x12   :  { %2121 = shalt.err (!%p2118_p7)
}
  0x13   :  { %s2149_s26 = smov 512   ;;  %s2150_s27 = smov 32  }
  0x14   :  { %24 = dma.hbm_to_vmem [thread:$0]  %s2573_s0, 4096, %s19_s18, [#allocation6], %s2149_s26, %s2149_s26, %s2150_s27  }
  0x15   :  { %s2151_s30 = smov [#allocation7]   ;;  %s2122_s8 = scalar_lea.hbm %s2574_s1, 8192 }
  0x16   :  { %s30_s5 = sshll.u32 %s2151_s30, 4  ;;  %p2123_p8 = scmp.ne.s32.totalorder %s2574_s1, %s2122_s8  ;;  %s31_s5 = int_to_ptr.vmem [resolvable:$true] %s30_s5 }
  0x17   :  { %p2126_p9 = scmp.lt.u32.totalorder %s2122_s8, %s2574_s1 }
  0x19   :  { %p2128_p10 = pnand %p2126_p9, %p2123_p8 }
  0x1b   :  { %2131 = shalt.err (!%p2128_p10)
}
  0x1c   :  { %s2132_s13 = scalar_lea.vmem %s31_s5, 8192  ;;  %p2137_p12 = scmp.lt.s32.totalorder %s31_s5, %s31_s5 }
  0x1d   :  { %p2133_p11 = scmp.ne.s32.totalorder %s31_s5, %s2132_s13  ;;  %p2138_p13 = scmp.lt.s32.totalorder %s2132_s13, %s2132_s13 }
  0x1f   :  { %p2139_p0 = por %p2138_p13, %p2137_p12 }
  0x21   :  { %p2140_p1 = pnand %p2139_p0, %p2133_p11 }
  0x23   :  { %2143 = shalt.err (!%p2140_p1)
}
  0x24   :  { %36 = dma.hbm_to_vmem [thread:$0]  %s2574_s1, 8192, %s31_s5, [#allocation8], %s2149_s26, %s2149_s26, %s2150_s27  }
  0x25   :  { %2144 = dma.done.wait [#allocation6], 4096  }
  0x26   :  { %2145 = vsyncadd [#allocation6], 4294963200 }
  0x27   :  { %2146 = dma.done.wait [#allocation8], 8192  }
  0x28   :  { %2147 = vsyncadd [#allocation8], 4294959104  ;;  %v2152_v1 = vmov 0.0   ;;  %v60_v2 = vld [vmem:[#allocation7 + $0x8] sm:$0xff]  ;;  %v59_v4 = vld [vmem:[#allocation7] sm:$0xff]  ;;  %vm1493_vm0 = vcmask 7168  }
  0x29   :  { %187 = vmatprep.mubr.f32.mxu0 %v2152_v1  ;;  %258 = vmatprep.mubr.f32.mxu1 %v2152_v1  ;;  %v64_v3 = vld [vmem:[#allocation7 + $0x28] sm:$0xff]  ;;  %v63_v6 = vld [vmem:[#allocation7 + $0x20] sm:$0xff]  ;;  %v62_v13 = vld [vmem:[#allocation7 + $0x18] sm:$0xff] }
  0x2a   :  { %v2207_v5 = vpack.c.bf16 %v64_v3, %v60_v2  ;;  %v68_v7 = vld [vmem:[#allocation7 + $0x48] sm:$0xff]  ;;  %v2209_v9 = vpack.c.bf16 %v63_v6, %v59_v4  ;;  %v67_v11 = vld [vmem:[#allocation7 + $0x40] sm:$0xff]  ;;  %v66_v14 = vld [vmem:[#allocation7 + $0x38] sm:$0xff] }
  0x2b   :  { %v72_v8 = vld [vmem:[#allocation7 + $0x68] sm:$0xff]  ;;  %v71_v12 = vld [vmem:[#allocation7 + $0x60] sm:$0xff]  ;;  %v61_v15 = vld [vmem:[#allocation7 + $0x10] sm:$0xff]  ;;  %v2217_v18 = vpack.c.bf16 %v66_v14, %v62_v13 }
  0x2c   :  { %v2211_v10 = vpack.c.bf16 %v72_v8, %v68_v7  ;;  %1504 = vmatprep.subr.bf16.mxu0 %v2207_v5  ;;  %v65_v16 = vld [vmem:[#allocation7 + $0x30] sm:$0xff]  ;;  %v2215_v17 = vpack.c.bf16 %v71_v12, %v67_v11  ;;  %v76_v20 = vld [vmem:[#allocation7 + $0x88] sm:$0xff]  ;;  %v75_v22 = vld [vmem:[#allocation7 + $0x80] sm:$0xff] }
  0x2d   :  { %1506 = vmatpush1.bf16.msra.mxu0 %v2209_v9  ;;  %v2219_v19 = vpack.c.bf16 %v65_v16, %v61_v15  ;;  %v80_v21 = vld [vmem:[#allocation7 + $0xa8] sm:$0xff]  ;;  %v79_v24 = vld [vmem:[#allocation7 + $0xa0] sm:$0xff]  ;;  %v70_v25 = vld [vmem:[#allocation7 + $0x58] sm:$0xff]  ;;  %1536 = vmatprep.subr.bf16.mxu1 %v2217_v18 }
  0x2e   :  { %1508 = vmatprep.subr.bf16.mxu0 %v2211_v10  ;;  %v2222_v23 = vpack.c.bf16 %v80_v21, %v76_v20  ;;  %v74_v26 = vld [vmem:[#allocation7 + $0x78] sm:$0xff]  ;;  %v69_v28 = vld [vmem:[#allocation7 + $0x50] sm:$0xff]  ;;  %v84_v30 = vld [vmem:[#allocation7 + $0xc8] sm:$0xff]  ;;  %v2231_v33 = vpack.c.bf16 %v79_v24, %v75_v22 }
  0x2f   :  { %v2225_v27 = vpack.c.bf16 %v74_v26, %v70_v25  ;;  %v73_v29 = vld [vmem:[#allocation7 + $0x70] sm:$0xff]  ;;  %1538 = vmatpush1.bf16.msra.mxu1 %v2219_v19  ;;  %v88_v32 = vld [vmem:[#allocation7 + $0xe8] sm:$0xff]  ;;  %v78_v34 = vld [vmem:[#allocation7 + $0x98] sm:$0xff] }
  0x30   :  { %v2228_v31 = vpack.c.bf16 %v73_v29, %v69_v28  ;;  %v82_v35 = vld [vmem:[#allocation7 + $0xb8] sm:$0xff]  ;;  %v77_v36 = vld [vmem:[#allocation7 + $0x90] sm:$0xff]  ;;  %v2235_v37 = vpack.c.bf16 %v88_v32, %v84_v30  ;;  %v83_v38 = vld [vmem:[#allocation7 + $0xc0] sm:$0xff] }
  0x31   :  { %1510 = vmatpush1.bf16.msra.mxu0 %v2215_v17  ;;  %1540 = vmatprep.subr.bf16.mxu1 %v2225_v27  ;;  %v87_v39 = vld [vmem:[#allocation7 + $0xe0] sm:$0xff]  ;;  %v2237_v40 = vpack.c.bf16 %v82_v35, %v78_v34  ;;  %v81_v41 = vld [vmem:[#allocation7 + $0xb0] sm:$0xff]  ;;  %v92_v42 = vld [vmem:[#allocation7 + $0x108] sm:$0xff] }
  0x32   :  { %1512 = vmatprep.subr.bf16.mxu0 %v2222_v23  ;;  %v96_v43 = vld [vmem:[#allocation7 + $0x128] sm:$0xff]  ;;  %v86_v44 = vld [vmem:[#allocation7 + $0xd8] sm:$0xff]  ;;  %v2240_v45 = vpack.c.bf16 %v81_v41, %v77_v36  ;;  %v2243_v47 = vpack.c.bf16 %v87_v39, %v83_v38  ;;  %v91_v48 = vld [vmem:[#allocation7 + $0x100] sm:$0xff] }
  0x33   :  { %1542 = vmatpush1.bf16.msra.mxu1 %v2228_v31  ;;  %v90_v46 = vld [vmem:[#allocation7 + $0xf8] sm:$0xff]  ;;  %v85_v50 = vld [vmem:[#allocation7 + $0xd0] sm:$0xff]  ;;  %v2249_v52 = vpack.c.bf16 %v96_v43, %v92_v42  ;;  %v95_v53 = vld [vmem:[#allocation7 + $0x120] sm:$0xff] }
  0x34   :  { %1544 = vmatprep.subr.bf16.mxu1 %v2237_v40  ;;  %v2246_v49 = vpack.c.bf16 %v90_v46, %v86_v44  ;;  %v89_v51 = vld [vmem:[#allocation7 + $0xf0] sm:$0xff]  ;;  %v94_v54 = vld [vmem:[#allocation7 + $0x118] sm:$0xff]  ;;  %v100_v56 = vld [vmem:[#allocation7 + $0x148] sm:$0xff]  ;;  %v2255_v59 = vpack.c.bf16 %v95_v53, %v91_v48 }
  0x35   :  { %1514 = vmatpush1.bf16.msra.mxu0 %v2231_v33  ;;  %v98_v55 = vld [vmem:[#allocation7 + $0x138] sm:$0xff]  ;;  %v104_v57 = vld [vmem:[#allocation7 + $0x168] sm:$0xff]  ;;  %v2252_v58 = vpack.c.bf16 %v89_v51, %v85_v50  ;;  %v99_v60 = vld [vmem:[#allocation7 + $0x140] sm:$0xff] }
  0x36   :  { %1516 = vmatprep.subr.bf16.mxu0 %v2235_v37  ;;  %v2258_v61 = vpack.c.bf16 %v98_v55, %v94_v54  ;;  %v93_v62 = vld [vmem:[#allocation7 + $0x110] sm:$0xff]  ;;  %v2261_v0 = vpack.c.bf16 %v104_v57, %v100_v56  ;;  %v103_v2 = vld [vmem:[#allocation7 + $0x160] sm:$0xff]  ;;  %v102_v3 = vld [vmem:[#allocation7 + $0x158] sm:$0xff] }
  0x37   :  { %1546 = vmatpush1.bf16.msra.mxu1 %v2240_v45  ;;  %v97_v63 = vld [vmem:[#allocation7 + $0x130] sm:$0xff]  ;;  %v106_v4 = vld [vmem:[#allocation7 + $0x178] sm:$0xff]  ;;  %v108_v6 = vld [vmem:[#allocation7 + $0x188] sm:$0xff]  ;;  %v2267_v11 = vpack.c.bf16 %v103_v2, %v99_v60 }
  0x38   :  { %1548 = vmatprep.subr.bf16.mxu1 %v2246_v49  ;;  %v112_v7 = vld [vmem:[#allocation7 + $0x1a8] sm:$0xff]  ;;  %v2264_v8 = vpack.c.bf16 %v97_v63, %v93_v62  ;;  %v107_v12 = vld [vmem:[#allocation7 + $0x180] sm:$0xff]  ;;  %v2270_v13 = vpack.c.bf16 %v106_v4, %v102_v3  ;;  %v101_v14 = vld [vmem:[#allocation7 + $0x150] sm:$0xff] }
  0x39   :  { %1518 = vmatpush1.bf16.msra.mxu0 %v2243_v47  ;;  %v105_v15 = vld [vmem:[#allocation7 + $0x170] sm:$0xff]  ;;  %v2273_v16 = vpack.c.bf16 %v112_v7, %v108_v6  ;;  %v111_v20 = vld [vmem:[#allocation7 + $0x1a0] sm:$0xff]  ;;  %v110_v21 = vld [vmem:[#allocation7 + $0x198] sm:$0xff] }
  0x3a   :  { %1520 = vmatprep.subr.bf16.mxu0 %v2249_v52  ;;  %v114_v22 = vld [vmem:[#allocation7 + $0x1b8] sm:$0xff]  ;;  %v116_v24 = vld [vmem:[#allocation7 + $0x1c8] sm:$0xff]  ;;  %v2276_v26 = vpack.c.bf16 %v105_v15, %v101_v14  ;;  %v2279_v28 = vpack.c.bf16 %v111_v20, %v107_v12  ;;  %v115_v29 = vld [vmem:[#allocation7 + $0x1c0] sm:$0xff] }
  0x3b   :  { %1550 = vmatpush1.bf16.msra.mxu1 %v2252_v58  ;;  %v120_v25 = vld [vmem:[#allocation7 + $0x1e8] sm:$0xff]  ;;  %v2282_v30 = vpack.c.bf16 %v114_v22, %v110_v21  ;;  %v109_v32 = vld [vmem:[#allocation7 + $0x190] sm:$0xff]  ;;  %v119_v36 = vld [vmem:[#allocation7 + $0x1e0] sm:$0xff] }
  0x3c   :  { %1552 = vmatprep.subr.bf16.mxu1 %v2258_v61  ;;  %v113_v34 = vld [vmem:[#allocation7 + $0x1b0] sm:$0xff]  ;;  %v2285_v35 = vpack.c.bf16 %v120_v25, %v116_v24  ;;  %v118_v38 = vld [vmem:[#allocation7 + $0x1d8] sm:$0xff]  ;;  %v2291_v42 = vpack.c.bf16 %v119_v36, %v115_v29  ;;  %v55_v50 = vld [vmem:[#allocation5] sm:$0xff] }
  0x3d   :  { %1522 = vmatpush1.bf16.msra.mxu0 %v2255_v59  ;;  %v122_v39 = vld [vmem:[#allocation7 + $0x1f8] sm:$0xff]  ;;  %v2288_v41 = vpack.c.bf16 %v113_v34, %v109_v32  ;;  %v117_v44 = vld [vmem:[#allocation7 + $0x1d0] sm:$0xff]  ;;  %v56_v51 = vld [vmem:[#allocation5 + $0x8] sm:$0xff] }
  0x3e   :  { %1524 = vmatprep.subr.bf16.mxu0 %v2261_v0  ;;  %v2294_v43 = vpack.c.bf16 %v122_v39, %v118_v38  ;;  %v121_v46 = vld [vmem:[#allocation7 + $0x1f0] sm:$0xff]  ;;  %v58_v4 = vld [vmem:[#allocation5 + $0x18] sm:$0xff] }
  0x3f   :  { %1554 = vmatpush1.bf16.msra.mxu1 %v2264_v8  ;;  %v2298_v48 = vpack.c.bf16 %v121_v46, %v117_v44  ;;  %v57_v56 = vld [vmem:[#allocation5 + $0x10] sm:$0xff]  ;;  %v288_v46 = vld [vmem:[#allocation5 + $0x20] sm:$0xff] }
  0x40   :  { %1556 = vmatprep.subr.bf16.mxu1 %v2270_v13 }
  0x41   :  { %1526 = vmatpush1.bf16.msra.mxu0 %v2267_v11 }
  0x42   :  { %1528 = vmatprep.subr.bf16.mxu0 %v2273_v16 }
  0x43   :  { %1558 = vmatpush1.bf16.msra.mxu1 %v2276_v26 }
  0x44   :  { %1560 = vmatprep.subr.bf16.mxu1 %v2282_v30 }
  0x45   :  { %1530 = vmatpush1.bf16.msra.mxu0 %v2279_v28 }
  0x46   :  { %1532 = vmatprep.subr.bf16.mxu0 %v2285_v35 }
  0x47   :  { %1562 = vmatpush1.bf16.msra.mxu1 %v2288_v41 }
  0x48   :  { %1564 = vmatprep.subr.bf16.mxu1 %v2294_v43 }
  0x49   :  { %1534 = vmatpush1.bf16.msra.mxu0 %v2291_v42 }
  0x4a   :  { %1568 = vmatprep.subr.bf16.mxu0 %v2207_v5 }
  0x4b   :  { %1566 = vmatpush1.bf16.msra.mxu1 %v2298_v48 }
  0x4c   :  { %188 = vmatmul.mubr.f32.vlgmr.msra.gmra.mrb[0].mxu0 %v2152_v1  ;;  %1600 = vmatprep.subr.bf16.mxu1 %v2217_v18 }
  0x4d   :  { %1570 = vmatpush1.bf16.msra.mxu0 %v2209_v9  ;;  %356 = vmatprep.mubr.f32.mxu0 %v2152_v1 }
  0x4e   :  { %1572 = vmatprep.subr.bf16.mxu0 %v2211_v10  ;;  %259 = vmatmul.mubr.f32.vlgmr.msra.gmra.mrb[0].mxu1 %v2152_v1 }
  0x4f   :  { %1602 = vmatpush1.bf16.msra.mxu1 %v2219_v19  ;;  %427 = vmatprep.mubr.f32.mxu1 %v2152_v1 }
  0x50   :  { %1604 = vmatprep.subr.bf16.mxu1 %v2225_v27 }
  0x51   :  { %1574 = vmatpush1.bf16.msra.mxu0 %v2215_v17 }
  0x52   :  { %1576 = vmatprep.subr.bf16.mxu0 %v2222_v23 }
  0x53   :  { %1606 = vmatpush1.bf16.msra.mxu1 %v2228_v31 }
  0x54   :  { %1608 = vmatprep.subr.bf16.mxu1 %v2237_v40 }
  0x55   :  { %1578 = vmatpush1.bf16.msra.mxu0 %v2231_v33 }
  0x56   :  { %1580 = vmatprep.subr.bf16.mxu0 %v2235_v37 }
  0x57   :  { %1610 = vmatpush1.bf16.msra.mxu1 %v2240_v45 }
  0x58   :  { %1612 = vmatprep.subr.bf16.mxu1 %v2246_v49 }
  0x59   :  { %1582 = vmatpush1.bf16.msra.mxu0 %v2243_v47 }
  0x5a   :  { %1584 = vmatprep.subr.bf16.mxu0 %v2249_v52 }
  0x5b   :  { %1614 = vmatpush1.bf16.msra.mxu1 %v2252_v58 }
  0x5c   :  { %1616 = vmatprep.subr.bf16.mxu1 %v2258_v61 }
  0x5d   :  { %1586 = vmatpush1.bf16.msra.mxu0 %v2255_v59 }
  0x5e   :  { %1588 = vmatprep.subr.bf16.mxu0 %v2261_v0 }
  0x5f   :  { %1618 = vmatpush1.bf16.msra.mxu1 %v2264_v8 }
  0x60   :  { %1620 = vmatprep.subr.bf16.mxu1 %v2270_v13 }
  0x61   :  { %1590 = vmatpush1.bf16.msra.mxu0 %v2267_v11 }
  0x62   :  { %1592 = vmatprep.subr.bf16.mxu0 %v2273_v16 }
  0x63   :  { %1622 = vmatpush1.bf16.msra.mxu1 %v2276_v26 }
  0x64   :  { %1624 = vmatprep.subr.bf16.mxu1 %v2282_v30 }
  0x65   :  { %1594 = vmatpush1.bf16.msra.mxu0 %v2279_v28 }
  0x66   :  { %1596 = vmatprep.subr.bf16.mxu0 %v2285_v35 }
  0x67   :  { %1626 = vmatpush1.bf16.msra.mxu1 %v2288_v41 }
  0x68   :  { %1628 = vmatprep.subr.bf16.mxu1 %v2294_v43 }
  0x69   :  { %1598 = vmatpush1.bf16.msra.mxu0 %v2291_v42 }
  0x6a   :  { %1632 = vmatprep.subr.bf16.mxu0 %v2207_v5 }
  0x6b   :  { %1630 = vmatpush1.bf16.msra.mxu1 %v2298_v48 }
  0x6c   :  { %1664 = vmatprep.subr.bf16.mxu1 %v2217_v18 }
 0x11f   :  { %v189_v53 = vpop.f32.mrb[0].mxu0 }
 0x120   :  { %v265_v54 = vadd.f32 %v189_v53, %v55_v50  ;;  %v191_v55 = vpop.f32.mrb[1].mxu0  ;;  %v289_v50 = vld [vmem:[#allocation5 + $0x28] sm:$0xff] }
 0x121   :  { %v266_v57 = vadd.f32 %v191_v55, %v56_v51  ;;  %v260_v62 = vpop.f32.mrb[0].mxu1 }
 0x122   :  { %v269_v60 = vmul.f32 0.5, %v265_v54  ;;  %v267_v2 = vadd.f32 %v260_v62, %v57_v56  ;;  %v262_v3 = vpop.f32.mrb[1].mxu1 }
 0x123   :  { %v273_v63 = vmul.f32 0.5, %v266_v57  ;;  %v268_v6 = vadd.f32 %v262_v3, %v58_v4  ;;  %v290_v57 = vld [vmem:[#allocation5 + $0x30] sm:$0xff]  ;;  %v291_v3 = vld [vmem:[#allocation5 + $0x38] sm:$0xff] }
 0x124   :  { %2020 = vtanh.f32 %v269_v60 }
 0x125   :  { %2022 = vtanh.f32 %v273_v63  ;;  %v278_v7 = vmul.f32 0.5, %v268_v6 }
 0x126   :  { %2024 = vtanh.f32 %v267_v2 }
 0x127   :  { %2026 = vtanh.f32 %v278_v7 }
 0x12e   :  { %v2021_v12 = vpop.eup %2020 }
 0x12f   :  { %v2023_v14 = vpop.eup %2022  ;;  %v271_v15 = vadd.f32 1.0, %v2021_v12 }
 0x130   :  { %v2025_v20 = vpop.eup %2024  ;;  %v275_v21 = vadd.f32 1.0, %v2023_v14 }
 0x131   :  { %v272_v22 = vmul.f32 0.5, %v271_v15  ;;  %v2027_v34 = vpop.eup %2026 }
 0x132   :  { %v276_v24 = vmul.f32 0.5, %v275_v21  ;;  %v280_v36 = vadd.f32 1.0, %v2027_v34 }
 0x133   :  { %v283_v25 = vmul.f32 %v2025_v20, %v272_v22 }
 0x134   :  { %v282_v29 = vmul.f32 0.0, %v276_v24  ;;  %v281_v38 = vmul.f32 0.5, %v280_v36 }
 0x136   :  { %v2341_v32 = vadd.f32 %v283_v25, %v282_v29 }
 0x138   :  { %2028 = vtanh.f32 %v2341_v32 }
 0x142   :  { %v2029_v39 = vpop.eup %2028 }
 0x143   :  { %v286_v44 = vmul.f32 %v2029_v39, %v281_v38 }
 0x145   :  { %357 = vmatmul.mubr.f32.vlgmr.msra.gmra.mrb[2].mxu0 %v286_v44  ;;  %428 = vmatmul.mubr.f32.vlgmr.msra.gmra.mrb[2].mxu1 %v286_v44 }
 0x146   :  { %1634 = vmatpush1.bf16.msra.mxu0 %v2209_v9  ;;  %1666 = vmatpush1.bf16.msra.mxu1 %v2219_v19 }
 0x147   :  { %1636 = vmatprep.subr.bf16.mxu0 %v2211_v10  ;;  %1668 = vmatprep.subr.bf16.mxu1 %v2225_v27 }
 0x148   :  { %525 = vmatprep.mubr.f32.mxu0 %v2152_v1  ;;  %596 = vmatprep.mubr.f32.mxu1 %v2152_v1 }
 0x14a   :  { %1638 = vmatpush1.bf16.msra.mxu0 %v2215_v17  ;;  %1670 = vmatpush1.bf16.msra.mxu1 %v2228_v31 }
 0x14b   :  { %1640 = vmatprep.subr.bf16.mxu0 %v2222_v23  ;;  %1672 = vmatprep.subr.bf16.mxu1 %v2237_v40 }
 0x14e   :  { %1642 = vmatpush1.bf16.msra.mxu0 %v2231_v33  ;;  %1674 = vmatpush1.bf16.msra.mxu1 %v2240_v45 }
 0x14f   :  { %1644 = vmatprep.subr.bf16.mxu0 %v2235_v37  ;;  %1676 = vmatprep.subr.bf16.mxu1 %v2246_v49 }
 0x152   :  { %1646 = vmatpush1.bf16.msra.mxu0 %v2243_v47  ;;  %1678 = vmatpush1.bf16.msra.mxu1 %v2252_v58 }
 0x153   :  { %1648 = vmatprep.subr.bf16.mxu0 %v2249_v52  ;;  %1680 = vmatprep.subr.bf16.mxu1 %v2258_v61 }
 0x156   :  { %1650 = vmatpush1.bf16.msra.mxu0 %v2255_v59  ;;  %1682 = vmatpush1.bf16.msra.mxu1 %v2264_v8 }
 0x157   :  { %1652 = vmatprep.subr.bf16.mxu0 %v2261_v0  ;;  %1684 = vmatprep.subr.bf16.mxu1 %v2270_v13 }
 0x15a   :  { %1654 = vmatpush1.bf16.msra.mxu0 %v2267_v11  ;;  %1686 = vmatpush1.bf16.msra.mxu1 %v2276_v26 }
 0x15b   :  { %1656 = vmatprep.subr.bf16.mxu0 %v2273_v16  ;;  %1688 = vmatprep.subr.bf16.mxu1 %v2282_v30 }
 0x15e   :  { %1658 = vmatpush1.bf16.msra.mxu0 %v2279_v28  ;;  %1690 = vmatpush1.bf16.msra.mxu1 %v2288_v41 }
 0x15f   :  { %1660 = vmatprep.subr.bf16.mxu0 %v2285_v35  ;;  %1692 = vmatprep.subr.bf16.mxu1 %v2294_v43 }
 0x162   :  { %1662 = vmatpush1.bf16.msra.mxu0 %v2291_v42  ;;  %1694 = vmatpush1.bf16.msra.mxu1 %v2298_v48 }
 0x163   :  { %1696 = vmatprep.subr.bf16.mxu0 %v2207_v5  ;;  %1728 = vmatprep.subr.bf16.mxu1 %v2217_v18 }
 0x218   :  { %v358_v51 = vpop.f32.mrb[2].mxu0  ;;  %v429_v53 = vpop.f32.mrb[2].mxu1 }
 0x219   :  { %v434_v54 = vadd.f32 %v358_v51, %v288_v46  ;;  %v360_v55 = vpop.f32.mrb[3].mxu0  ;;  %v431_v56 = vpop.f32.mrb[3].mxu1  ;;  %v436_v2 = vadd.f32 %v429_v53, %v290_v57  ;;  %v458_v46 = vld [vmem:[#allocation5 + $0x48] sm:$0xff] }
 0x21a   :  { %v435_v60 = vadd.f32 %v360_v55, %v289_v50  ;;  %v437_v4 = vadd.f32 %v431_v56, %v291_v3  ;;  %v459_v56 = vld [vmem:[#allocation5 + $0x50] sm:$0xff] }
 0x21b   :  { %v438_v62 = vmul.f32 0.5, %v434_v54 }
 0x21c   :  { %v442_v63 = vmul.f32 0.5, %v435_v60  ;;  %v447_v6 = vmul.f32 0.5, %v437_v4 }
 0x21d   :  { %2030 = vtanh.f32 %v438_v62 }
 0x21e   :  { %2032 = vtanh.f32 %v442_v63 }
 0x21f   :  { %2034 = vtanh.f32 %v436_v2  ;;  %v460_v2 = vld [vmem:[#allocation5 + $0x58] sm:$0xff] }
 0x220   :  { %2036 = vtanh.f32 %v447_v6 }
 0x227   :  { %v2031_v7 = vpop.eup %2030 }
 0x228   :  { %v2033_v12 = vpop.eup %2032  ;;  %v440_v14 = vadd.f32 1.0, %v2031_v7 }
 0x229   :  { %v444_v15 = vadd.f32 1.0, %v2033_v12  ;;  %v2035_v21 = vpop.eup %2034 }
 0x22a   :  { %v441_v20 = vmul.f32 0.5, %v440_v14  ;;  %v2037_v34 = vpop.eup %2036 }
 0x22b   :  { %v445_v22 = vmul.f32 0.5, %v444_v15  ;;  %v449_v36 = vadd.f32 1.0, %v2037_v34 }
 0x22c   :  { %v452_v24 = vmul.f32 %v2035_v21, %v441_v20 }
 0x22d   :  { %v451_v25 = vmul.f32 %v445_v22, %v2341_v32  ;;  %v450_v38 = vmul.f32 0.5, %v449_v36  ;;  %v457_v32 = vld [vmem:[#allocation5 + $0x40] sm:$0xff] }
 0x22f   :  { %v2379_v29 = vadd.f32 %v452_v24, %v451_v25 }
 0x231   :  { %2038 = vtanh.f32 %v2379_v29 }
 0x23b   :  { %v2039_v39 = vpop.eup %2038 }
 0x23c   :  { %v455_v44 = vmul.f32 %v2039_v39, %v450_v38 }
 0x23e   :  { %526 = vmatmul.mubr.f32.vlgmr.msra.gmra.mrb[4].mxu0 %v455_v44  ;;  %597 = vmatmul.mubr.f32.vlgmr.msra.gmra.mrb[4].mxu1 %v455_v44 }
 0x23f   :  { %1698 = vmatpush1.bf16.msra.mxu0 %v2209_v9  ;;  %1730 = vmatpush1.bf16.msra.mxu1 %v2219_v19 }
 0x240   :  { %1700 = vmatprep.subr.bf16.mxu0 %v2211_v10  ;;  %1732 = vmatprep.subr.bf16.mxu1 %v2225_v27 }
 0x241   :  { %694 = vmatprep.mubr.f32.mxu0 %v2152_v1  ;;  %765 = vmatprep.mubr.f32.mxu1 %v2152_v1 }
 0x243   :  { %1702 = vmatpush1.bf16.msra.mxu0 %v2215_v17  ;;  %1734 = vmatpush1.bf16.msra.mxu1 %v2228_v31 }
 0x244   :  { %1704 = vmatprep.subr.bf16.mxu0 %v2222_v23  ;;  %1736 = vmatprep.subr.bf16.mxu1 %v2237_v40 }
 0x247   :  { %1706 = vmatpush1.bf16.msra.mxu0 %v2231_v33  ;;  %1738 = vmatpush1.bf16.msra.mxu1 %v2240_v45 }
 0x248   :  { %1708 = vmatprep.subr.bf16.mxu0 %v2235_v37  ;;  %1740 = vmatprep.subr.bf16.mxu1 %v2246_v49 }
 0x24b   :  { %1710 = vmatpush1.bf16.msra.mxu0 %v2243_v47  ;;  %1742 = vmatpush1.bf16.msra.mxu1 %v2252_v58 }
 0x24c   :  { %1712 = vmatprep.subr.bf16.mxu0 %v2249_v52  ;;  %1744 = vmatprep.subr.bf16.mxu1 %v2258_v61 }
 0x24f   :  { %1714 = vmatpush1.bf16.msra.mxu0 %v2255_v59  ;;  %1746 = vmatpush1.bf16.msra.mxu1 %v2264_v8 }
 0x250   :  { %1716 = vmatprep.subr.bf16.mxu0 %v2261_v0  ;;  %1748 = vmatprep.subr.bf16.mxu1 %v2270_v13 }
 0x253   :  { %1718 = vmatpush1.bf16.msra.mxu0 %v2267_v11  ;;  %1750 = vmatpush1.bf16.msra.mxu1 %v2276_v26 }
 0x254   :  { %1720 = vmatprep.subr.bf16.mxu0 %v2273_v16  ;;  %1752 = vmatprep.subr.bf16.mxu1 %v2282_v30 }
 0x257   :  { %1722 = vmatpush1.bf16.msra.mxu0 %v2279_v28  ;;  %1754 = vmatpush1.bf16.msra.mxu1 %v2288_v41 }
 0x258   :  { %1724 = vmatprep.subr.bf16.mxu0 %v2285_v35  ;;  %1756 = vmatprep.subr.bf16.mxu1 %v2294_v43 }
 0x25b   :  { %1726 = vmatpush1.bf16.msra.mxu0 %v2291_v42  ;;  %1758 = vmatpush1.bf16.msra.mxu1 %v2298_v48 }
 0x25c   :  { %1760 = vmatprep.subr.bf16.mxu0 %v2207_v5  ;;  %1792 = vmatprep.subr.bf16.mxu1 %v2217_v18 }
 0x311   :  { %v527_v50 = vpop.f32.mrb[4].mxu0  ;;  %v598_v51 = vpop.f32.mrb[4].mxu1 }
 0x312   :  { %v603_v53 = vadd.f32 %v527_v50, %v457_v32  ;;  %v529_v54 = vpop.f32.mrb[5].mxu0  ;;  %v600_v55 = vpop.f32.mrb[5].mxu1  ;;  %v605_v63 = vadd.f32 %v598_v51, %v459_v56  ;;  %v627_v32 = vld [vmem:[#allocation5 + $0x68] sm:$0xff] }
 0x313   :  { %v604_v57 = vadd.f32 %v529_v54, %v458_v46  ;;  %v606_v3 = vadd.f32 %v600_v55, %v460_v2  ;;  %v628_v55 = vld [vmem:[#allocation5 + $0x70] sm:$0xff] }
 0x314   :  { %v607_v60 = vmul.f32 0.5, %v603_v53 }
 0x315   :  { %v611_v62 = vmul.f32 0.5, %v604_v57  ;;  %v616_v4 = vmul.f32 0.5, %v606_v3 }
 0x316   :  { %2040 = vtanh.f32 %v607_v60 }
 0x317   :  { %2042 = vtanh.f32 %v611_v62 }
 0x318   :  { %2044 = vtanh.f32 %v605_v63  ;;  %v629_v63 = vld [vmem:[#allocation5 + $0x78] sm:$0xff] }
 0x319   :  { %2046 = vtanh.f32 %v616_v4 }
 0x320   :  { %v2041_v6 = vpop.eup %2040 }
 0x321   :  { %v2043_v7 = vpop.eup %2042  ;;  %v609_v12 = vadd.f32 1.0, %v2041_v6 }
 0x322   :  { %v613_v14 = vadd.f32 1.0, %v2043_v7  ;;  %v2045_v20 = vpop.eup %2044 }
 0x323   :  { %v610_v15 = vmul.f32 0.5, %v609_v12  ;;  %v2047_v34 = vpop.eup %2046 }
 0x324   :  { %v614_v21 = vmul.f32 0.5, %v613_v14  ;;  %v618_v36 = vadd.f32 1.0, %v2047_v34 }
 0x325   :  { %v621_v22 = vmul.f32 %v2045_v20, %v610_v15 }
 0x326   :  { %v620_v24 = vmul.f32 %v614_v21, %v2379_v29  ;;  %v619_v38 = vmul.f32 0.5, %v618_v36  ;;  %v626_v29 = vld [vmem:[#allocation5 + $0x60] sm:$0xff] }
 0x328   :  { %v2417_v25 = vadd.f32 %v621_v22, %v620_v24 }
 0x32a   :  { %2048 = vtanh.f32 %v2417_v25 }
 0x334   :  { %v2049_v39 = vpop.eup %2048 }
 0x335   :  { %v624_v44 = vmul.f32 %v2049_v39, %v619_v38 }
 0x337   :  { %695 = vmatmul.mubr.f32.vlgmr.msra.gmra.mrb[6].mxu0 %v624_v44  ;;  %766 = vmatmul.mubr.f32.vlgmr.msra.gmra.mrb[6].mxu1 %v624_v44 }
 0x338   :  { %1762 = vmatpush1.bf16.msra.mxu0 %v2209_v9  ;;  %1794 = vmatpush1.bf16.msra.mxu1 %v2219_v19 }
 0x339   :  { %1764 = vmatprep.subr.bf16.mxu0 %v2211_v10  ;;  %1796 = vmatprep.subr.bf16.mxu1 %v2225_v27 }
 0x33a   :  { %863 = vmatprep.mubr.f32.mxu0 %v2152_v1  ;;  %934 = vmatprep.mubr.f32.mxu1 %v2152_v1 }
 0x33c   :  { %1766 = vmatpush1.bf16.msra.mxu0 %v2215_v17  ;;  %1798 = vmatpush1.bf16.msra.mxu1 %v2228_v31 }
 0x33d   :  { %1768 = vmatprep.subr.bf16.mxu0 %v2222_v23  ;;  %1800 = vmatprep.subr.bf16.mxu1 %v2237_v40 }
 0x340   :  { %1770 = vmatpush1.bf16.msra.mxu0 %v2231_v33  ;;  %1802 = vmatpush1.bf16.msra.mxu1 %v2240_v45 }
 0x341   :  { %1772 = vmatprep.subr.bf16.mxu0 %v2235_v37  ;;  %1804 = vmatprep.subr.bf16.mxu1 %v2246_v49 }
 0x344   :  { %1774 = vmatpush1.bf16.msra.mxu0 %v2243_v47  ;;  %1806 = vmatpush1.bf16.msra.mxu1 %v2252_v58 }
 0x345   :  { %1776 = vmatprep.subr.bf16.mxu0 %v2249_v52  ;;  %1808 = vmatprep.subr.bf16.mxu1 %v2258_v61 }
 0x348   :  { %1778 = vmatpush1.bf16.msra.mxu0 %v2255_v59  ;;  %1810 = vmatpush1.bf16.msra.mxu1 %v2264_v8 }
 0x349   :  { %1780 = vmatprep.subr.bf16.mxu0 %v2261_v0  ;;  %1812 = vmatprep.subr.bf16.mxu1 %v2270_v13 }
 0x34c   :  { %1782 = vmatpush1.bf16.msra.mxu0 %v2267_v11  ;;  %1814 = vmatpush1.bf16.msra.mxu1 %v2276_v26 }
 0x34d   :  { %1784 = vmatprep.subr.bf16.mxu0 %v2273_v16  ;;  %1816 = vmatprep.subr.bf16.mxu1 %v2282_v30 }
 0x350   :  { %1786 = vmatpush1.bf16.msra.mxu0 %v2279_v28  ;;  %1818 = vmatpush1.bf16.msra.mxu1 %v2288_v41 }
 0x351   :  { %1788 = vmatprep.subr.bf16.mxu0 %v2285_v35  ;;  %1820 = vmatprep.subr.bf16.mxu1 %v2294_v43 }
 0x354   :  { %1790 = vmatpush1.bf16.msra.mxu0 %v2291_v42  ;;  %1822 = vmatpush1.bf16.msra.mxu1 %v2298_v48 }
 0x355   :  { %1824 = vmatprep.subr.bf16.mxu0 %v2207_v5  ;;  %1856 = vmatprep.subr.bf16.mxu1 %v2217_v18 }
 0x40a   :  { %v696_v46 = vpop.f32.mrb[6].mxu0  ;;  %v767_v50 = vpop.f32.mrb[6].mxu1 }
 0x40b   :  { %v772_v51 = vadd.f32 %v696_v46, %v626_v29  ;;  %v698_v53 = vpop.f32.mrb[7].mxu0  ;;  %v769_v54 = vpop.f32.mrb[7].mxu1  ;;  %v774_v62 = vadd.f32 %v767_v50, %v628_v55  ;;  %v796_v29 = vld [vmem:[#allocation5 + $0x88] sm:$0xff] }
 0x40c   :  { %v773_v56 = vadd.f32 %v698_v53, %v627_v32  ;;  %v775_v2 = vadd.f32 %v769_v54, %v629_v63  ;;  %v797_v54 = vld [vmem:[#allocation5 + $0x90] sm:$0xff] }
 0x40d   :  { %v776_v57 = vmul.f32 0.5, %v772_v51 }
 0x40e   :  { %v780_v60 = vmul.f32 0.5, %v773_v56  ;;  %v785_v3 = vmul.f32 0.5, %v775_v2 }
 0x40f   :  { %2050 = vtanh.f32 %v776_v57 }
 0x410   :  { %2052 = vtanh.f32 %v780_v60 }
 0x411   :  { %2054 = vtanh.f32 %v774_v62  ;;  %v798_v62 = vld [vmem:[#allocation5 + $0x98] sm:$0xff] }
 0x412   :  { %2056 = vtanh.f32 %v785_v3 }
 0x419   :  { %v2051_v4 = vpop.eup %2050 }
 0x41a   :  { %v2053_v6 = vpop.eup %2052  ;;  %v778_v7 = vadd.f32 1.0, %v2051_v4 }
 0x41b   :  { %v782_v12 = vadd.f32 1.0, %v2053_v6  ;;  %v2055_v15 = vpop.eup %2054 }
 0x41c   :  { %v779_v14 = vmul.f32 0.5, %v778_v7  ;;  %v2057_v34 = vpop.eup %2056 }
 0x41d   :  { %v783_v20 = vmul.f32 0.5, %v782_v12  ;;  %v787_v36 = vadd.f32 1.0, %v2057_v34 }
 0x41e   :  { %v790_v21 = vmul.f32 %v2055_v15, %v779_v14 }
 0x41f   :  { %v789_v22 = vmul.f32 %v783_v20, %v2417_v25  ;;  %v788_v38 = vmul.f32 0.5, %v787_v36  ;;  %v795_v25 = vld [vmem:[#allocation5 + $0x80] sm:$0xff] }
 0x421   :  { %v2455_v24 = vadd.f32 %v790_v21, %v789_v22 }
 0x423   :  { %2058 = vtanh.f32 %v2455_v24 }
 0x42d   :  { %v2059_v39 = vpop.eup %2058 }
 0x42e   :  { %v793_v44 = vmul.f32 %v2059_v39, %v788_v38 }
 0x430   :  { %864 = vmatmul.mubr.f32.vlgmr.msra.gmra.mrb[8].mxu0 %v793_v44  ;;  %935 = vmatmul.mubr.f32.vlgmr.msra.gmra.mrb[8].mxu1 %v793_v44 }
 0x431   :  { %1826 = vmatpush1.bf16.msra.mxu0 %v2209_v9  ;;  %1858 = vmatpush1.bf16.msra.mxu1 %v2219_v19 }
 0x432   :  { %1828 = vmatprep.subr.bf16.mxu0 %v2211_v10  ;;  %1860 = vmatprep.subr.bf16.mxu1 %v2225_v27 }
 0x433   :  { %1032 = vmatprep.mubr.f32.mxu0 %v2152_v1  ;;  %1103 = vmatprep.mubr.f32.mxu1 %v2152_v1 }
 0x435   :  { %1830 = vmatpush1.bf16.msra.mxu0 %v2215_v17  ;;  %1862 = vmatpush1.bf16.msra.mxu1 %v2228_v31 }
 0x436   :  { %1832 = vmatprep.subr.bf16.mxu0 %v2222_v23  ;;  %1864 = vmatprep.subr.bf16.mxu1 %v2237_v40 }
 0x439   :  { %1834 = vmatpush1.bf16.msra.mxu0 %v2231_v33  ;;  %1866 = vmatpush1.bf16.msra.mxu1 %v2240_v45 }
 0x43a   :  { %1836 = vmatprep.subr.bf16.mxu0 %v2235_v37  ;;  %1868 = vmatprep.subr.bf16.mxu1 %v2246_v49 }
 0x43d   :  { %1838 = vmatpush1.bf16.msra.mxu0 %v2243_v47  ;;  %1870 = vmatpush1.bf16.msra.mxu1 %v2252_v58 }
 0x43e   :  { %1840 = vmatprep.subr.bf16.mxu0 %v2249_v52  ;;  %1872 = vmatprep.subr.bf16.mxu1 %v2258_v61 }
 0x441   :  { %1842 = vmatpush1.bf16.msra.mxu0 %v2255_v59  ;;  %1874 = vmatpush1.bf16.msra.mxu1 %v2264_v8 }
 0x442   :  { %1844 = vmatprep.subr.bf16.mxu0 %v2261_v0  ;;  %1876 = vmatprep.subr.bf16.mxu1 %v2270_v13 }
 0x445   :  { %1846 = vmatpush1.bf16.msra.mxu0 %v2267_v11  ;;  %1878 = vmatpush1.bf16.msra.mxu1 %v2276_v26 }
 0x446   :  { %1848 = vmatprep.subr.bf16.mxu0 %v2273_v16  ;;  %1880 = vmatprep.subr.bf16.mxu1 %v2282_v30 }
 0x449   :  { %1850 = vmatpush1.bf16.msra.mxu0 %v2279_v28  ;;  %1882 = vmatpush1.bf16.msra.mxu1 %v2288_v41 }
 0x44a   :  { %1852 = vmatprep.subr.bf16.mxu0 %v2285_v35  ;;  %1884 = vmatprep.subr.bf16.mxu1 %v2294_v43 }
 0x44d   :  { %1854 = vmatpush1.bf16.msra.mxu0 %v2291_v42  ;;  %1886 = vmatpush1.bf16.msra.mxu1 %v2298_v48 }
 0x44e   :  { %1888 = vmatprep.subr.bf16.mxu0 %v2207_v5  ;;  %1920 = vmatprep.subr.bf16.mxu1 %v2217_v18 }
 0x503   :  { %v865_v32 = vpop.f32.mrb[8].mxu0  ;;  %v936_v46 = vpop.f32.mrb[8].mxu1 }
 0x504   :  { %v941_v50 = vadd.f32 %v865_v32, %v795_v25  ;;  %v867_v51 = vpop.f32.mrb[9].mxu0  ;;  %v938_v53 = vpop.f32.mrb[9].mxu1  ;;  %v943_v60 = vadd.f32 %v936_v46, %v797_v54  ;;  %v965_v25 = vld [vmem:[#allocation5 + $0xa8] sm:$0xff] }
 0x505   :  { %v942_v55 = vadd.f32 %v867_v51, %v796_v29  ;;  %v944_v63 = vadd.f32 %v938_v53, %v798_v62  ;;  %v966_v53 = vld [vmem:[#allocation5 + $0xb0] sm:$0xff] }
 0x506   :  { %v945_v56 = vmul.f32 0.5, %v941_v50 }
 0x507   :  { %v949_v57 = vmul.f32 0.5, %v942_v55  ;;  %v954_v2 = vmul.f32 0.5, %v944_v63 }
 0x508   :  { %2060 = vtanh.f32 %v945_v56 }
 0x509   :  { %2062 = vtanh.f32 %v949_v57 }
 0x50a   :  { %2064 = vtanh.f32 %v943_v60  ;;  %v967_v60 = vld [vmem:[#allocation5 + $0xb8] sm:$0xff] }
 0x50b   :  { %2066 = vtanh.f32 %v954_v2 }
 0x512   :  { %v2061_v3 = vpop.eup %2060 }
 0x513   :  { %v2063_v4 = vpop.eup %2062  ;;  %v947_v6 = vadd.f32 1.0, %v2061_v3 }
 0x514   :  { %v951_v7 = vadd.f32 1.0, %v2063_v4  ;;  %v2065_v14 = vpop.eup %2064 }
 0x515   :  { %v948_v12 = vmul.f32 0.5, %v947_v6  ;;  %v2067_v34 = vpop.eup %2066 }
 0x516   :  { %v952_v15 = vmul.f32 0.5, %v951_v7  ;;  %v956_v36 = vadd.f32 1.0, %v2067_v34 }
 0x517   :  { %v959_v20 = vmul.f32 %v2065_v14, %v948_v12 }
 0x518   :  { %v958_v21 = vmul.f32 %v952_v15, %v2455_v24  ;;  %v957_v38 = vmul.f32 0.5, %v956_v36  ;;  %v964_v24 = vld [vmem:[#allocation5 + $0xa0] sm:$0xff] }
 0x51a   :  { %v2493_v22 = vadd.f32 %v959_v20, %v958_v21 }
 0x51c   :  { %2068 = vtanh.f32 %v2493_v22 }
 0x526   :  { %v2069_v39 = vpop.eup %2068 }
 0x527   :  { %v962_v44 = vmul.f32 %v2069_v39, %v957_v38 }
 0x529   :  { %1033 = vmatmul.mubr.f32.vlgmr.msra.gmra.mrb[10].mxu0 %v962_v44  ;;  %1104 = vmatmul.mubr.f32.vlgmr.msra.gmra.mrb[10].mxu1 %v962_v44 }
 0x52a   :  { %1890 = vmatpush1.bf16.msra.mxu0 %v2209_v9  ;;  %1922 = vmatpush1.bf16.msra.mxu1 %v2219_v19 }
 0x52b   :  { %1892 = vmatprep.subr.bf16.mxu0 %v2211_v10  ;;  %1924 = vmatprep.subr.bf16.mxu1 %v2225_v27 }
 0x52c   :  { %1201 = vmatprep.mubr.f32.mxu0 %v2152_v1  ;;  %1272 = vmatprep.mubr.f32.mxu1 %v2152_v1 }
 0x52e   :  { %1894 = vmatpush1.bf16.msra.mxu0 %v2215_v17  ;;  %1926 = vmatpush1.bf16.msra.mxu1 %v2228_v31 }
 0x52f   :  { %1896 = vmatprep.subr.bf16.mxu0 %v2222_v23  ;;  %1928 = vmatprep.subr.bf16.mxu1 %v2237_v40 }
 0x532   :  { %1898 = vmatpush1.bf16.msra.mxu0 %v2231_v33  ;;  %1930 = vmatpush1.bf16.msra.mxu1 %v2240_v45 }
 0x533   :  { %1900 = vmatprep.subr.bf16.mxu0 %v2235_v37  ;;  %1932 = vmatprep.subr.bf16.mxu1 %v2246_v49 }
 0x536   :  { %1902 = vmatpush1.bf16.msra.mxu0 %v2243_v47  ;;  %1934 = vmatpush1.bf16.msra.mxu1 %v2252_v58 }
 0x537   :  { %1904 = vmatprep.subr.bf16.mxu0 %v2249_v52  ;;  %1936 = vmatprep.subr.bf16.mxu1 %v2258_v61 }
 0x53a   :  { %1906 = vmatpush1.bf16.msra.mxu0 %v2255_v59  ;;  %1938 = vmatpush1.bf16.msra.mxu1 %v2264_v8 }
 0x53b   :  { %1908 = vmatprep.subr.bf16.mxu0 %v2261_v0  ;;  %1940 = vmatprep.subr.bf16.mxu1 %v2270_v13 }
 0x53e   :  { %1910 = vmatpush1.bf16.msra.mxu0 %v2267_v11  ;;  %1942 = vmatpush1.bf16.msra.mxu1 %v2276_v26 }
 0x53f   :  { %1912 = vmatprep.subr.bf16.mxu0 %v2273_v16  ;;  %1944 = vmatprep.subr.bf16.mxu1 %v2282_v30 }
 0x542   :  { %1914 = vmatpush1.bf16.msra.mxu0 %v2279_v28  ;;  %1946 = vmatpush1.bf16.msra.mxu1 %v2288_v41 }
 0x543   :  { %1916 = vmatprep.subr.bf16.mxu0 %v2285_v35  ;;  %1948 = vmatprep.subr.bf16.mxu1 %v2294_v43 }
 0x546   :  { %1918 = vmatpush1.bf16.msra.mxu0 %v2291_v42  ;;  %1950 = vmatpush1.bf16.msra.mxu1 %v2298_v48 }
 0x547   :  { %1952 = vmatprep.subr.bf16.mxu0 %v2207_v5  ;;  %1984 = vmatprep.subr.bf16.mxu1 %v2217_v18 }
 0x5fc   :  { %v1034_v29 = vpop.f32.mrb[10].mxu0  ;;  %v1105_v32 = vpop.f32.mrb[10].mxu1 }
 0x5fd   :  { %v1110_v46 = vadd.f32 %v1034_v29, %v964_v24  ;;  %v1036_v50 = vpop.f32.mrb[11].mxu0  ;;  %v1107_v51 = vpop.f32.mrb[11].mxu1  ;;  %v1112_v57 = vadd.f32 %v1105_v32, %v966_v53  ;;  %v1304_v32 = vld [vmem:[#allocation5 + $0xf0] sm:$0xff] }
 0x5fe   :  { %v1111_v54 = vadd.f32 %v1036_v50, %v965_v25  ;;  %v1113_v62 = vadd.f32 %v1107_v51, %v967_v60 }
 0x5ff   :  { %v1114_v55 = vmul.f32 0.5, %v1110_v46 }
 0x600   :  { %v1118_v56 = vmul.f32 0.5, %v1111_v54  ;;  %v1123_v5 = vmul.f32 0.5, %v1113_v62  ;;  %v1305_v54 = vld [vmem:[#allocation5 + $0xf8] sm:$0xff] }
 0x601   :  { %2070 = vtanh.f32 %v1114_v55 }
 0x602   :  { %2072 = vtanh.f32 %v1118_v56 }
 0x603   :  { %2074 = vtanh.f32 %v1112_v57 }
 0x604   :  { %2076 = vtanh.f32 %v1123_v5 }
 0x60b   :  { %v2071_v63 = vpop.eup %2070 }
 0x60c   :  { %v2073_v18 = vpop.eup %2072  ;;  %v1116_v2 = vadd.f32 1.0, %v2071_v63 }
 0x60d   :  { %v1120_v3 = vadd.f32 1.0, %v2073_v18  ;;  %v2075_v6 = vpop.eup %2074 }
 0x60e   :  { %v1117_v4 = vmul.f32 0.5, %v1116_v2  ;;  %v2077_v20 = vpop.eup %2076 }
 0x60f   :  { %v1121_v7 = vmul.f32 0.5, %v1120_v3  ;;  %v1125_v21 = vadd.f32 1.0, %v2077_v20  ;;  %v1501_v20 = vld [vmem:[%s2575_s2] ss:$0 sm:$0xff] }
 0x610   :  { %v1128_v12 = vmul.f32 %v2075_v6, %v1117_v4 }
 0x611   :  { %v1127_v14 = vmul.f32 %v1121_v7, %v2493_v22  ;;  %v1126_v34 = vmul.f32 0.5, %v1125_v21  ;;  %v1303_v22 = vld [vmem:[#allocation5 + $0xe8] sm:$0xff] }
 0x613   :  { %v2531_v15 = vadd.f32 %v1128_v12, %v1127_v14 }
 0x615   :  { %2078 = vtanh.f32 %v2531_v15 }
 0x61f   :  { %v2079_v36 = vpop.eup %2078 }
 0x620   :  { %v1131_v38 = vmul.f32 %v2079_v36, %v1126_v34  ;;  %v1502_v36 = vld [vmem:[#allocation4] ss:$0 sm:$0xff] }
 0x622   :  { %1202 = vmatmul.mubr.f32.vlgmr.msra.gmra.mrb[12].mxu0 %v1131_v38  ;;  %1273 = vmatmul.mubr.f32.vlgmr.msra.gmra.mrb[12].mxu1 %v1131_v38 }
 0x623   :  { %1954 = vmatpush1.bf16.msra.mxu0 %v2209_v9  ;;  %1986 = vmatpush1.bf16.msra.mxu1 %v2219_v19  ;;  %v1134_v9 = vld [vmem:[#allocation5 + $0xc8] sm:$0xff] }
 0x624   :  { %1956 = vmatprep.subr.bf16.mxu0 %v2211_v10  ;;  %1988 = vmatprep.subr.bf16.mxu1 %v2225_v27 }
 0x625   :  { %1370 = vmatprep.mubr.f32.mxu0 %v2152_v1  ;;  %1441 = vmatprep.mubr.f32.mxu1 %v2152_v1  ;;  %v1133_v1 = vld [vmem:[#allocation5 + $0xc0] sm:$0xff] }
 0x627   :  { %1958 = vmatpush1.bf16.msra.mxu0 %v2215_v17  ;;  %1990 = vmatpush1.bf16.msra.mxu1 %v2228_v31  ;;  %v1135_v31 = vld [vmem:[#allocation5 + $0xd0] sm:$0xff] }
 0x628   :  { %1960 = vmatprep.subr.bf16.mxu0 %v2222_v23  ;;  %1992 = vmatprep.subr.bf16.mxu1 %v2237_v40 }
 0x62b   :  { %1962 = vmatpush1.bf16.msra.mxu0 %v2231_v33  ;;  %1994 = vmatpush1.bf16.msra.mxu1 %v2240_v45 }
 0x62c   :  { %1964 = vmatprep.subr.bf16.mxu0 %v2235_v37  ;;  %1996 = vmatprep.subr.bf16.mxu1 %v2246_v49 }
 0x62f   :  { %1966 = vmatpush1.bf16.msra.mxu0 %v2243_v47  ;;  %1998 = vmatpush1.bf16.msra.mxu1 %v2252_v58  ;;  %v1136_v47 = vld [vmem:[#allocation5 + $0xd8] sm:$0xff] }
 0x630   :  { %1968 = vmatprep.subr.bf16.mxu0 %v2249_v52  ;;  %2000 = vmatprep.subr.bf16.mxu1 %v2258_v61 }
 0x633   :  { %1970 = vmatpush1.bf16.msra.mxu0 %v2255_v59  ;;  %2002 = vmatpush1.bf16.msra.mxu1 %v2264_v8 }
 0x634   :  { %1972 = vmatprep.subr.bf16.mxu0 %v2261_v0  ;;  %2004 = vmatprep.subr.bf16.mxu1 %v2270_v13 }
 0x637   :  { %1974 = vmatpush1.bf16.msra.mxu0 %v2267_v11  ;;  %2006 = vmatpush1.bf16.msra.mxu1 %v2276_v26 }
 0x638   :  { %1976 = vmatprep.subr.bf16.mxu0 %v2273_v16  ;;  %2008 = vmatprep.subr.bf16.mxu1 %v2282_v30 }
 0x63b   :  { %1978 = vmatpush1.bf16.msra.mxu0 %v2279_v28  ;;  %2010 = vmatpush1.bf16.msra.mxu1 %v2288_v41 }
 0x63c   :  { %1980 = vmatprep.subr.bf16.mxu0 %v2285_v35  ;;  %2012 = vmatprep.subr.bf16.mxu1 %v2294_v43 }
 0x63f   :  { %1982 = vmatpush1.bf16.msra.mxu0 %v2291_v42  ;;  %2014 = vmatpush1.bf16.msra.mxu1 %v2298_v48  ;;  %v1302_v48 = vld [vmem:[#allocation5 + $0xe0] sm:$0xff] }
 0x6f5   :  { %v1203_v10 = vpop.f32.mrb[12].mxu0  ;;  %v1274_v17 = vpop.f32.mrb[12].mxu1 }
 0x6f6   :  { %v1279_v19 = vadd.f32 %v1203_v10, %v1133_v1  ;;  %v1205_v23 = vpop.f32.mrb[13].mxu0  ;;  %v1276_v27 = vpop.f32.mrb[13].mxu1  ;;  %v1281_v45 = vadd.f32 %v1274_v17, %v1135_v31 }
 0x6f7   :  { %v1280_v33 = vadd.f32 %v1205_v23, %v1134_v9  ;;  %v1282_v49 = vadd.f32 %v1276_v27, %v1136_v47 }
 0x6f8   :  { %v1283_v37 = vmul.f32 0.5, %v1279_v19 }
 0x6f9   :  { %v1287_v40 = vmul.f32 0.5, %v1280_v33  ;;  %v1292_v52 = vmul.f32 0.5, %v1282_v49 }
 0x6fa   :  { %2080 = vtanh.f32 %v1283_v37 }
 0x6fb   :  { %2082 = vtanh.f32 %v1287_v40 }
 0x6fc   :  { %2084 = vtanh.f32 %v1281_v45 }
 0x6fd   :  { %2086 = vtanh.f32 %v1292_v52 }
 0x704   :  { %v2081_v58 = vpop.eup %2080 }
 0x705   :  { %v2083_v59 = vpop.eup %2082  ;;  %v1285_v61 = vadd.f32 1.0, %v2081_v58 }
 0x706   :  { %v1289_v0 = vadd.f32 1.0, %v2083_v59  ;;  %v2085_v11 = vpop.eup %2084 }
 0x707   :  { %v1286_v8 = vmul.f32 0.5, %v1285_v61  ;;  %v2087_v30 = vpop.eup %2086 }
 0x708   :  { %v1290_v13 = vmul.f32 0.5, %v1289_v0  ;;  %v1294_v35 = vadd.f32 1.0, %v2087_v30 }
 0x709   :  { %v1297_v16 = vmul.f32 %v2085_v11, %v1286_v8 }
 0x70a   :  { %v1296_v26 = vmul.f32 %v1290_v13, %v2531_v15  ;;  %v1295_v41 = vmul.f32 0.5, %v1294_v35 }
 0x70c   :  { %v1298_v28 = vadd.f32 %v1297_v16, %v1296_v26 }
 0x70e   :  { %2088 = vtanh.f32 %v1298_v28 }
 0x718   :  { %v2089_v42 = vpop.eup %2088 }
 0x719   :  { %v1300_v43 = vmul.f32 %v2089_v42, %v1295_v41 }
 0x71b   :  { %1371 = vmatmul.mubr.f32.vlgmr.msra.gmra.mrb[14].mxu0 %v1300_v43  ;;  %1442 = vmatmul.mubr.f32.vlgmr.msra.gmra.mrb[14].mxu1 %v1300_v43 }
 0x7ee   :  { %v1372_v39 = vpop.f32.mrb[14].mxu0  ;;  %v1443_v44 = vpop.f32.mrb[14].mxu1 }
 0x7ef   :  { %v1448_v24 = vadd.f32 %v1372_v39, %v1302_v48  ;;  %v1374_v25 = vpop.f32.mrb[15].mxu0  ;;  %v1445_v29 = vpop.f32.mrb[15].mxu1  ;;  %v1450_v53 = vadd.f32 %v1443_v44, %v1304_v32 }
 0x7f0   :  { %v1449_v46 = vadd.f32 %v1374_v25, %v1303_v22  ;;  %v1451_v55 = vadd.f32 %v1445_v29, %v1305_v54 }
 0x7f1   :  { %v1452_v50 = vmul.f32 0.5, %v1448_v24 }
 0x7f2   :  { %v1456_v51 = vmul.f32 0.5, %v1449_v46  ;;  %v1461_v56 = vmul.f32 0.5, %v1451_v55 }
 0x7f3   :  { %2090 = vtanh.f32 %v1452_v50 }
 0x7f4   :  { %2092 = vtanh.f32 %v1456_v51 }
 0x7f5   :  { %2094 = vtanh.f32 %v1450_v53 }
 0x7f6   :  { %2096 = vtanh.f32 %v1461_v56 }
 0x7fd   :  { %v2091_v57 = vpop.eup %2090 }
 0x7fe   :  { %v2093_v60 = vpop.eup %2092  ;;  %v1454_v62 = vadd.f32 1.0, %v2091_v57 }
 0x7ff   :  { %v1458_v5 = vadd.f32 1.0, %v2093_v60  ;;  %v2095_v18 = vpop.eup %2094 }
 0x800   :  { %v1455_v63 = vmul.f32 0.5, %v1454_v62  ;;  %v2097_v7 = vpop.eup %2096 }
 0x801   :  { %v1459_v2 = vmul.f32 0.5, %v1458_v5  ;;  %v1463_v12 = vadd.f32 1.0, %v2097_v7 }
 0x802   :  { %v1466_v3 = vmul.f32 %v2095_v18, %v1455_v63 }
 0x803   :  { %v1465_v4 = vmul.f32 %v1459_v2, %v1298_v28  ;;  %v1464_v14 = vmul.f32 0.5, %v1463_v12 }
 0x805   :  { %v1467_v6 = vadd.f32 %v1466_v3, %v1465_v4 }
 0x807   :  { %2098 = vtanh.f32 %v1467_v6 }
 0x811   :  { %v2099_v15 = vpop.eup %2098 }
 0x812   :  { %v1469_v21 = vmul.f32 %v2099_v15, %v1464_v14 }
 0x814   :  { %v1482_v34 = vmul.f32 %v1501_v20, %v1469_v21 }
 0x816   :  { %1483 = vadd.xlane.f32.xlu0 %v1482_v34 }
 0x8a3   :  { %v1484_v38 = vpop.xlane.xlu0 %1483 }
 0x8a4   :  { %v1492_v1 = vadd.f32 %v1502_v36, %v1484_v38 }
 0x8a6   :  { %1494 = vst.msk [vmem:[%s2577_s4] sm:$0xff] %vm1493_vm0, %v1492_v1 }
 0x8a7   :  { %1499 = vsyncpa [#allocation6], 1 }
 0x8a8   :  { %1500 = vsyncpa [#allocation8], 1 }

</bundles_post_ra>
